<compile_context>
chip_gen: v5e
topology: v5e:2x2
jax: 0.10.0
libtpu: 0.0.40
codegen_flags: <defaults>
</compile_context>

<pallas_src>
import jax
import jax.numpy as jnp
from jax import lax
from jax.experimental import pallas as pl
from jax.experimental.pallas import tpu as pltpu

# Model hyper-parameters: Transformer(dim, depth, heads, dim_head, mlp_dim)
DIM      = 32
DEPTH    = 2
HEADS    = 4
DIM_HEAD = 8
MLP_DIM  = 64
INNER    = HEADS * DIM_HEAD          # 32
LN_EPS   = 1e-5
SCALE    = DIM_HEAD ** (-0.5)
LANES    = 128

# Row offsets of each weight matrix inside the per-layer (W_ROWS, 128) bf16 slab.
R_WQKV = 0
R_WO   = R_WQKV + DIM                # 32
R_W1   = R_WO + INNER                # 64
R_W2   = R_W1 + DIM                  # 96
W_ROWS = R_W2 + MLP_DIM              # 160  (multiple of bf16 sublane tile 16)

# Row indices inside the per-layer (8, 128) f32 vector slab.
V_LN1W, V_LN1B, V_BO, V_LN2W, V_LN2B, V_B2, V_B1 = 0, 1, 2, 3, 4, 5, 6


def _layernorm(x, w, b):
    # x: (M, D) f32; w, b: (1, D) f32
    mu = jnp.mean(x, axis=-1, keepdims=True)
    var = jnp.mean(jnp.square(x - mu), axis=-1, keepdims=True)
    return (x - mu) * lax.rsqrt(var + LN_EPS) * w + b


def _make_kernel(seq_len, bpb):
    """Fused kernel: ALL transformer layers for one block of `bpb` batch elements.

    Refs:
      x_ref    : (bpb*seq_len, DIM)   f32   rows = (batch_elem, seq_pos) flattened
      wmat_ref : (DEPTH, W_ROWS, 128) bf16  wqkv | wo | w1 | w2, lane-padded
      wvec_ref : (DEPTH, 8, 128)      f32   ln1_w, ln1_b, b_o, ln2_w, ln2_b, b_2, b_1
      o_ref    : (bpb*seq_len, DIM)   f32
      head_ref : (bpb*seq_len, INNER) f32   VMEM scratch for per-head outputs
    """
    bf16 = jnp.bfloat16

    def kernel(x_ref, wmat_ref, wvec_ref, o_ref, head_ref):
        x = x_ref[...]                                   # (MB, D) f32

        for l in range(DEPTH):                           # static unroll (DEPTH=2)
            vd = wvec_ref[l]                             # (8, 128) f32 -> 1 vreg
            ln1_w, ln1_b = vd[V_LN1W:V_LN1W + 1, :DIM], vd[V_LN1B:V_LN1B + 1, :DIM]
            ln2_w, ln2_b = vd[V_LN2W:V_LN2W + 1, :DIM], vd[V_LN2B:V_LN2B + 1, :DIM]
            b_o = vd[V_BO:V_BO + 1, :DIM]
            b_2 = vd[V_B2:V_B2 + 1, :DIM]
            b_1 = vd[V_B1:V_B1 + 1, :MLP_DIM]

            wqkv = wmat_ref[l, R_WQKV:R_WQKV + DIM, :3 * INNER]    # (32, 96)  bf16
            wo   = wmat_ref[l, R_WO:R_WO + INNER, :DIM]            # (32, 32)  bf16
            w1   = wmat_ref[l, R_W1:R_W1 + DIM, :MLP_DIM]          # (32, 64)  bf16
            w2   = wmat_ref[l, R_W2:R_W2 + MLP_DIM, :DIM]          # (64, 32)  bf16

            # ---- PreNorm + Attention ----
            xn = _layernorm(x, ln1_w, ln1_b)                       # (MB, D) f32
            qkv = jnp.dot(xn.astype(bf16), wqkv,
                          preferred_element_type=jnp.float32)      # (MB, 96) f32

            # Per-batch-element, per-head attention (no block-diagonal bias:
            # FLOPs / VMEM stay linear in batch).  Head outputs land in the
            # (MB, INNER) scratch at static offsets; w_o is applied once below.
            for b in range(bpb):                                   # static unroll
                r0 = b * seq_len
                for h in range(HEADS):                             # static unroll
                    lo = h * DIM_HEAD
                    q = qkv[r0:r0 + seq_len, lo:lo + DIM_HEAD].astype(bf16)
                    k = qkv[r0:r0 + seq_len,
                            INNER + lo:INNER + lo + DIM_HEAD].astype(bf16)
                    v = qkv[r0:r0 + seq_len,
                            2 * INNER + lo:2 * INNER + lo + DIM_HEAD].astype(bf16)
                    # dots = (q @ k^T) * scale  (contract head dim, no transpose op)
                    dots = lax.dot_general(
                        q, k, (((1,), (1,)), ((), ())),
                        preferred_element_type=jnp.float32) * SCALE      # (N, N)
                    dots = dots - jnp.max(dots, axis=-1, keepdims=True)
                    e = jnp.exp(dots)
                    p = e / jnp.sum(e, axis=-1, keepdims=True)           # exact div
                    ho = jnp.dot(p.astype(bf16), v,
                                 preferred_element_type=jnp.float32)     # (N, Dh)
                    head_ref[r0:r0 + seq_len, lo:lo + DIM_HEAD] = ho

            attn_out = jnp.dot(head_ref[...].astype(bf16), wo,
                               preferred_element_type=jnp.float32)  # (MB, D) f32
            x = x + attn_out + b_o                                   # residual

            # ---- PreNorm + FeedForward ----
            xn2 = _layernorm(x, ln2_w, ln2_b)
            hid = jnp.dot(xn2.astype(bf16), w1,
                          preferred_element_type=jnp.float32) + b_1
            hid = jnp.maximum(hid, 0.0)                              # ReLU
            x = x + jnp.dot(hid.astype(bf16), w2,
                            preferred_element_type=jnp.float32) + b_2

        o_ref[...] = x

    return kernel


def _pack_params(layer_params):
    """Pack the 11 per-layer tensors into 2 lane-dense (128-wide) slabs."""
    def pad2(a):   # pad matrix lanes to 128
        return jnp.pad(a, ((0, 0), (0, LANES - a.shape[1])))

    def pad1(v):   # pad vector to 128 lanes
        return jnp.pad(v, (0, LANES - v.shape[0]))

    wmat, wvec = [], []
    for p in layer_params:
        wmat.append(jnp.concatenate(
            [pad2(p['w_qkv']), pad2(p['w_o']), pad2(p['w_1']), pad2(p['w_2'])],
            axis=0).astype(jnp.bfloat16))                       # (W_ROWS, 128) bf16
        wvec.append(jnp.stack(
            [pad1(p['ln1_w']), pad1(p['ln1_b']), pad1(p['b_o']),
             pad1(p['ln2_w']), pad1(p['ln2_b']), pad1(p['b_2']),
             pad1(p['b_1']), jnp.zeros((LANES,), jnp.float32)]))  # (8, 128) f32
    return jnp.stack(wmat), jnp.stack(wvec)  # (DEPTH, 160, 128) bf16, (DEPTH, 8, 128) f32


def _num_tensorcores():
    """Best-effort TensorCore-per-device count (1 on v5e/v6e, 2 on v7x)."""
    try:
        info = pltpu.get_tpu_info()
        for name in ("num_cores", "num_tensorcores", "tensorcores_per_chip",
                     "cores_per_chip", "core_count"):
            n = getattr(info, name, None)
            if n:
                return int(n)
    except Exception:
        pass
    try:
        return max(1, int(getattr(jax.devices()[0], "num_cores", 1)))
    except Exception:
        return 1


def transformer_forward(x, layer_params):
    """Full Transformer forward: one fused pallas_call for all layers & batch."""
    B, N, D = x.shape
    assert D == DIM
    wmat, wvec = _pack_params(layer_params)

    # Split the batch across grid blocks ONLY when there is >1 TensorCore to
    # shard onto (v7x).  On single-TC chips (v5e/v6e) extra grid steps are
    # pure sequential overhead.  Guard on the (rows_per_block % 8) Mosaic rule.
    n_tc = _num_tensorcores()
    nblk = 1
    if n_tc > 1 and B % n_tc == 0 and ((B // n_tc) * N) % 8 == 0:
        nblk = n_tc
    bpb = B // nblk                                      # batch elems per block
    mb = bpb * N                                         # rows per block

    x_flat = x.reshape(B * N, D)                         # batch folded into M

    out = pl.pallas_call(
        _make_kernel(N, bpb),
        out_shape=jax.ShapeDtypeStruct((B * N, D), jnp.float32),
        grid=(nblk,),
        in_specs=[
            pl.BlockSpec((mb, D), lambda i: (i, 0)),         # activations
            pl.BlockSpec(wmat.shape, lambda i: (0, 0, 0)),   # resident bf16 weights
            pl.BlockSpec(wvec.shape, lambda i: (0, 0, 0)),   # resident f32 LN/bias
        ],
        out_specs=pl.BlockSpec((mb, D), lambda i: (i, 0)),
        scratch_shapes=[pltpu.VMEM((mb, INNER), jnp.float32)],  # per-head outputs
        compiler_params=pltpu.CompilerParams(dimension_semantics=("parallel",)),
    )(x_flat, wmat, wvec)

    return out.reshape(B, N, D)


# ----------------- parameter init (deterministic, synthetic) -----------------
def init_layer_params(key):
    ks = jax.random.split(key, 7)
    return {
        'ln1_w': jnp.ones((DIM,), jnp.float32),
        'ln1_b': jnp.zeros((DIM,), jnp.float32),
        'w_qkv': 0.05 * jax.random.normal(ks[0], (DIM, 3 * INNER), jnp.float32),
        'w_o':   0.05 * jax.random.normal(ks[1], (INNER, DIM), jnp.float32),
        'b_o':   0.01 * jax.random.normal(ks[2], (DIM,), jnp.float32),
        'ln2_w': jnp.ones((DIM,), jnp.float32),
        'ln2_b': jnp.zeros((DIM,), jnp.float32),
        'w_1':   0.05 * jax.random.normal(ks[3], (DIM, MLP_DIM), jnp.float32),
        'b_1':   0.01 * jax.random.normal(ks[4], (MLP_DIM,), jnp.float32),
        'w_2':   0.05 * jax.random.normal(ks[5], (MLP_DIM, DIM), jnp.float32),
        'b_2':   0.01 * jax.random.normal(ks[6], (DIM,), jnp.float32),
    }


# ----------------- pure-JAX reference for verification -----------------
def ref_layer(x, p):
    def ln(t, w, b):
        mu = t.mean(-1, keepdims=True)
        var = ((t - mu) ** 2).mean(-1, keepdims=True)
        return (t - mu) / jnp.sqrt(var + LN_EPS) * w + b

    B, N, _ = x.shape
    xn = ln(x, p['ln1_w'], p['ln1_b'])
    qkv = xn @ p['w_qkv']
    q, k, v = jnp.split(qkv, 3, axis=-1)
    split_heads = lambda t: t.reshape(B, N, HEADS, DIM_HEAD).transpose(0, 2, 1, 3)
    q, k, v = map(split_heads, (q, k, v))
    dots = jnp.einsum('bhid,bhjd->bhij', q, k) * SCALE
    attn = jax.nn.softmax(dots, axis=-1)
    out = jnp.einsum('bhij,bhjd->bhid', attn, v)
    out = out.transpose(0, 2, 1, 3).reshape(B, N, INNER)
    out = out @ p['w_o'] + p['b_o']
    x = x + out
    xn2 = ln(x, p['ln2_w'], p['ln2_b'])
    h = jax.nn.relu(xn2 @ p['w_1'] + p['b_1'])
    return x + (h @ p['w_2'] + p['b_2'])


def ref_forward(x, layer_params):
    for p in layer_params:
        x = ref_layer(x, p)
    return x


if __name__ == "__main__":
    B, N = 2, 8
    key = jax.random.PRNGKey(0)
    kx, kp = jax.random.split(key)
    x = jax.random.normal(kx, (B, N, DIM), jnp.float32)

    layer_keys = jax.random.split(kp, DEPTH)
    layer_params = [init_layer_params(k) for k in layer_keys]

    out = transformer_forward(x, layer_params)
    out = jax.block_until_ready(out)

    expected = ref_forward(x, layer_params)
    assert out.shape == (B, N, DIM)
    err = float(jnp.max(jnp.abs(out - expected)))
    # bf16 MXU operands introduce ~1e-3-level error vs. the pure-f32 reference.
    assert err < 1e-2, f"max abs err {err}"
    print("KERNEL_OK")
</pallas_src>

<mosaic_0001>
module attributes {stable_mosaic.version = 11 : i64} {
  func.func @kernel(%arg0: i32, %arg1: memref<16x32xf32, #tpu.memory_space<vmem>>, %arg2: memref<2x160x128xbf16, #tpu.memory_space<vmem>>, %arg3: memref<2x8x128xf32, #tpu.memory_space<vmem>>, %arg4: memref<16x32xf32, #tpu.memory_space<vmem>>, %arg5: memref<16x32xf32, #tpu.memory_space<vmem>>) attributes {dimension_semantics = [#tpu.dimension_semantics<parallel>], iteration_bounds = array<i64: 1>, scalar_prefetch = 0 : i64, scratch_operands = 1 : i64, tpu.core_type = #tpu.core_type<tc>, window_params = [{transform_indices = @transform_0, window_bounds = array<i64: 16, 32>}, {pipeline_mode = #tpu.pipeline_mode<synchronous>, transform_indices = @transform_1, window_bounds = array<i64: 2, 160, 128>}, {pipeline_mode = #tpu.pipeline_mode<synchronous>, transform_indices = @transform_2, window_bounds = array<i64: 2, 8, 128>}, {transform_indices = @transform_3, window_bounds = array<i64: 16, 32>}]} {
    %c0 = arith.constant 0 : index
    %c0_0 = arith.constant 0 : index
    %0 = vector.load %arg1[%c0, %c0_0] : memref<16x32xf32, #tpu.memory_space<vmem>>, vector<16x32xf32>
    %c0_1 = arith.constant 0 : index
    %c0_2 = arith.constant 0 : index
    %c0_3 = arith.constant 0 : index
    %1 = vector.load %arg3[%c0_1, %c0_2, %c0_3] : memref<2x8x128xf32, #tpu.memory_space<vmem>>, vector<1x8x128xf32>
    %2 = vector.shape_cast %1 : vector<1x8x128xf32> to vector<8x128xf32>
    %3 = vector.extract_strided_slice %2 {offsets = [0, 0], sizes = [1, 32], strides = [1, 1]} : vector<8x128xf32> to vector<1x32xf32>
    %4 = vector.extract_strided_slice %2 {offsets = [1, 0], sizes = [1, 32], strides = [1, 1]} : vector<8x128xf32> to vector<1x32xf32>
    %5 = vector.extract_strided_slice %2 {offsets = [3, 0], sizes = [1, 32], strides = [1, 1]} : vector<8x128xf32> to vector<1x32xf32>
    %6 = vector.extract_strided_slice %2 {offsets = [4, 0], sizes = [1, 32], strides = [1, 1]} : vector<8x128xf32> to vector<1x32xf32>
    %7 = vector.extract_strided_slice %2 {offsets = [2, 0], sizes = [1, 32], strides = [1, 1]} : vector<8x128xf32> to vector<1x32xf32>
    %8 = vector.extract_strided_slice %2 {offsets = [5, 0], sizes = [1, 32], strides = [1, 1]} : vector<8x128xf32> to vector<1x32xf32>
    %9 = vector.extract_strided_slice %2 {offsets = [6, 0], sizes = [1, 64], strides = [1, 1]} : vector<8x128xf32> to vector<1x64xf32>
    %c0_4 = arith.constant 0 : index
    %c0_5 = arith.constant 0 : index
    %c0_6 = arith.constant 0 : index
    %10 = vector.load %arg2[%c0_4, %c0_5, %c0_6] : memref<2x160x128xbf16, #tpu.memory_space<vmem>>, vector<1x32x96xbf16>
    %11 = vector.shape_cast %10 : vector<1x32x96xbf16> to vector<32x96xbf16>
    %c0_7 = arith.constant 0 : index
    %c32 = arith.constant 32 : index
    %c0_8 = arith.constant 0 : index
    %12 = vector.load %arg2[%c0_7, %c32, %c0_8] : memref<2x160x128xbf16, #tpu.memory_space<vmem>>, vector<1x32x32xbf16>
    %13 = vector.shape_cast %12 : vector<1x32x32xbf16> to vector<32x32xbf16>
    %c0_9 = arith.constant 0 : index
    %c64 = arith.constant 64 : index
    %c0_10 = arith.constant 0 : index
    %14 = vector.load %arg2[%c0_9, %c64, %c0_10] : memref<2x160x128xbf16, #tpu.memory_space<vmem>>, vector<1x32x64xbf16>
    %15 = vector.shape_cast %14 : vector<1x32x64xbf16> to vector<32x64xbf16>
    %c0_11 = arith.constant 0 : index
    %c96 = arith.constant 96 : index
    %c0_12 = arith.constant 0 : index
    %16 = vector.load %arg2[%c0_11, %c96, %c0_12] : memref<2x160x128xbf16, #tpu.memory_space<vmem>>, vector<1x64x32xbf16>
    %17 = vector.shape_cast %16 : vector<1x64x32xbf16> to vector<64x32xbf16>
    %cst = arith.constant dense<0.000000e+00> : vector<16xf32>
    %18 = vector.multi_reduction <add>, %0, %cst [1] : vector<16x32xf32> to vector<16xf32>
    %19 = vector.shape_cast %18 : vector<16xf32> to vector<16x1xf32>
    %cst_13 = arith.constant 3.200000e+01 : f32
    %20 = vector.broadcast %cst_13 : f32 to vector<16x1xf32>
    %21 = arith.divf %19, %20 : vector<16x1xf32>
    %22 = vector.broadcast %21 : vector<16x1xf32> to vector<16x32xf32>
    %23 = arith.subf %0, %22 : vector<16x32xf32>
    %24 = arith.mulf %23, %23 : vector<16x32xf32>
    %cst_14 = arith.constant dense<0.000000e+00> : vector<16xf32>
    %25 = vector.multi_reduction <add>, %24, %cst_14 [1] : vector<16x32xf32> to vector<16xf32>
    %26 = vector.shape_cast %25 : vector<16xf32> to vector<16x1xf32>
    %cst_15 = arith.constant 3.200000e+01 : f32
    %27 = vector.broadcast %cst_15 : f32 to vector<16x1xf32>
    %28 = arith.divf %26, %27 : vector<16x1xf32>
    %29 = vector.broadcast %21 : vector<16x1xf32> to vector<16x32xf32>
    %30 = arith.subf %0, %29 : vector<16x32xf32>
    %cst_16 = arith.constant 9.99999974E-6 : f32
    %31 = vector.broadcast %cst_16 : f32 to vector<16x1xf32>
    %32 = arith.addf %28, %31 : vector<16x1xf32>
    %33 = math.rsqrt %32 : vector<16x1xf32>
    %34 = vector.broadcast %33 : vector<16x1xf32> to vector<16x32xf32>
    %35 = arith.mulf %30, %34 : vector<16x32xf32>
    %36 = vector.broadcast %3 : vector<1x32xf32> to vector<16x32xf32>
    %37 = arith.mulf %35, %36 : vector<16x32xf32>
    %38 = vector.broadcast %4 : vector<1x32xf32> to vector<16x32xf32>
    %39 = arith.addf %37, %38 : vector<16x32xf32>
    %40 = arith.truncf %39 : vector<16x32xf32> to vector<16x32xbf16>
    %cst_17 = arith.constant dense<0.000000e+00> : vector<16x96xf32>
    %41 = tpu.matmul %40, %11, %cst_17 {dimension_numbers = #tpu.dot_dimension_numbers<[1], [0], [0], [1], [0, 0, 1, 1], [], []>} : vector<16x32xbf16>, vector<32x96xbf16>, vector<16x96xf32> -> vector<16x96xf32>
    %42 = vector.extract_strided_slice %41 {offsets = [0, 0], sizes = [8, 8], strides = [1, 1]} : vector<16x96xf32> to vector<8x8xf32>
    %43 = arith.truncf %42 : vector<8x8xf32> to vector<8x8xbf16>
    %44 = vector.extract_strided_slice %41 {offsets = [0, 32], sizes = [8, 8], strides = [1, 1]} : vector<16x96xf32> to vector<8x8xf32>
    %45 = arith.truncf %44 : vector<8x8xf32> to vector<8x8xbf16>
    %46 = vector.extract_strided_slice %41 {offsets = [0, 64], sizes = [8, 8], strides = [1, 1]} : vector<16x96xf32> to vector<8x8xf32>
    %47 = arith.truncf %46 : vector<8x8xf32> to vector<8x8xbf16>
    %cst_18 = arith.constant dense<0.000000e+00> : vector<8x8xf32>
    %48 = tpu.matmul %43, %45, %cst_18 {dimension_numbers = #tpu.dot_dimension_numbers<[1], [1], [0], [0], [0, 0, 1, 0], [], []>} : vector<8x8xbf16>, vector<8x8xbf16>, vector<8x8xf32> -> vector<8x8xf32>
    %cst_19 = arith.constant 0.353553385 : f32
    %49 = vector.broadcast %cst_19 : f32 to vector<8x8xf32>
    %50 = arith.mulf %48, %49 : vector<8x8xf32>
    %cst_20 = arith.constant dense<0xFF800000> : vector<8xf32>
    %51 = vector.multi_reduction <maximumf>, %50, %cst_20 [1] : vector<8x8xf32> to vector<8xf32>
    %52 = vector.shape_cast %51 : vector<8xf32> to vector<8x1xf32>
    %53 = vector.broadcast %52 : vector<8x1xf32> to vector<8x8xf32>
    %54 = arith.subf %50, %53 : vector<8x8xf32>
    %55 = math.exp %54 : vector<8x8xf32>
    %cst_21 = arith.constant dense<0.000000e+00> : vector<8xf32>
    %56 = vector.multi_reduction <add>, %55, %cst_21 [1] : vector<8x8xf32> to vector<8xf32>
    %57 = vector.shape_cast %56 : vector<8xf32> to vector<8x1xf32>
    %58 = vector.broadcast %57 : vector<8x1xf32> to vector<8x8xf32>
    %59 = arith.divf %55, %58 : vector<8x8xf32>
    %60 = arith.truncf %59 : vector<8x8xf32> to vector<8x8xbf16>
    %cst_22 = arith.constant dense<0.000000e+00> : vector<8x8xf32>
    %61 = tpu.matmul %60, %47, %cst_22 {dimension_numbers = #tpu.dot_dimension_numbers<[1], [0], [0], [1], [0, 0, 1, 1], [], []>} : vector<8x8xbf16>, vector<8x8xbf16>, vector<8x8xf32> -> vector<8x8xf32>
    %c0_23 = arith.constant 0 : index
    %c0_24 = arith.constant 0 : index
    %62 = vector.load %arg5[%c0_23, %c0_24] : memref<16x32xf32, #tpu.memory_space<vmem>>, vector<8x8xf32>
    tpu.vector_store %arg5[%c0_23, %c0_24], %61 {strides = array<i32>} : memref<16x32xf32, #tpu.memory_space<vmem>>, vector<8x8xf32>,
    %63 = vector.extract_strided_slice %41 {offsets = [0, 8], sizes = [8, 8], strides = [1, 1]} : vector<16x96xf32> to vector<8x8xf32>
    %64 = arith.truncf %63 : vector<8x8xf32> to vector<8x8xbf16>
    %65 = vector.extract_strided_slice %41 {offsets = [0, 40], sizes = [8, 8], strides = [1, 1]} : vector<16x96xf32> to vector<8x8xf32>
    %66 = arith.truncf %65 : vector<8x8xf32> to vector<8x8xbf16>
    %67 = vector.extract_strided_slice %41 {offsets = [0, 72], sizes = [8, 8], strides = [1, 1]} : vector<16x96xf32> to vector<8x8xf32>
    %68 = arith.truncf %67 : vector<8x8xf32> to vector<8x8xbf16>
    %cst_25 = arith.constant dense<0.000000e+00> : vector<8x8xf32>
    %69 = tpu.matmul %64, %66, %cst_25 {dimension_numbers = #tpu.dot_dimension_numbers<[1], [1], [0], [0], [0, 0, 1, 0], [], []>} : vector<8x8xbf16>, vector<8x8xbf16>, vector<8x8xf32> -> vector<8x8xf32>
    %cst_26 = arith.constant 0.353553385 : f32
    %70 = vector.broadcast %cst_26 : f32 to vector<8x8xf32>
    %71 = arith.mulf %69, %70 : vector<8x8xf32>
    %cst_27 = arith.constant dense<0xFF800000> : vector<8xf32>
    %72 = vector.multi_reduction <maximumf>, %71, %cst_27 [1] : vector<8x8xf32> to vector<8xf32>
    %73 = vector.shape_cast %72 : vector<8xf32> to vector<8x1xf32>
    %74 = vector.broadcast %73 : vector<8x1xf32> to vector<8x8xf32>
    %75 = arith.subf %71, %74 : vector<8x8xf32>
    %76 = math.exp %75 : vector<8x8xf32>
    %cst_28 = arith.constant dense<0.000000e+00> : vector<8xf32>
    %77 = vector.multi_reduction <add>, %76, %cst_28 [1] : vector<8x8xf32> to vector<8xf32>
    %78 = vector.shape_cast %77 : vector<8xf32> to vector<8x1xf32>
    %79 = vector.broadcast %78 : vector<8x1xf32> to vector<8x8xf32>
    %80 = arith.divf %76, %79 : vector<8x8xf32>
    %81 = arith.truncf %80 : vector<8x8xf32> to vector<8x8xbf16>
    %cst_29 = arith.constant dense<0.000000e+00> : vector<8x8xf32>
    %82 = tpu.matmul %81, %68, %cst_29 {dimension_numbers = #tpu.dot_dimension_numbers<[1], [0], [0], [1], [0, 0, 1, 1], [], []>} : vector<8x8xbf16>, vector<8x8xbf16>, vector<8x8xf32> -> vector<8x8xf32>
    %c0_30 = arith.constant 0 : index
    %c8 = arith.constant 8 : index
    %83 = vector.load %arg5[%c0_30, %c8] : memref<16x32xf32, #tpu.memory_space<vmem>>, vector<8x8xf32>
    tpu.vector_store %arg5[%c0_30, %c8], %82 {strides = array<i32>} : memref<16x32xf32, #tpu.memory_space<vmem>>, vector<8x8xf32>,
    %84 = vector.extract_strided_slice %41 {offsets = [0, 16], sizes = [8, 8], strides = [1, 1]} : vector<16x96xf32> to vector<8x8xf32>
    %85 = arith.truncf %84 : vector<8x8xf32> to vector<8x8xbf16>
    %86 = vector.extract_strided_slice %41 {offsets = [0, 48], sizes = [8, 8], strides = [1, 1]} : vector<16x96xf32> to vector<8x8xf32>
    %87 = arith.truncf %86 : vector<8x8xf32> to vector<8x8xbf16>
    %88 = vector.extract_strided_slice %41 {offsets = [0, 80], sizes = [8, 8], strides = [1, 1]} : vector<16x96xf32> to vector<8x8xf32>
    %89 = arith.truncf %88 : vector<8x8xf32> to vector<8x8xbf16>
    %cst_31 = arith.constant dense<0.000000e+00> : vector<8x8xf32>
    %90 = tpu.matmul %85, %87, %cst_31 {dimension_numbers = #tpu.dot_dimension_numbers<[1], [1], [0], [0], [0, 0, 1, 0], [], []>} : vector<8x8xbf16>, vector<8x8xbf16>, vector<8x8xf32> -> vector<8x8xf32>
    %cst_32 = arith.constant 0.353553385 : f32
    %91 = vector.broadcast %cst_32 : f32 to vector<8x8xf32>
    %92 = arith.mulf %90, %91 : vector<8x8xf32>
    %cst_33 = arith.constant dense<0xFF800000> : vector<8xf32>
    %93 = vector.multi_reduction <maximumf>, %92, %cst_33 [1] : vector<8x8xf32> to vector<8xf32>
    %94 = vector.shape_cast %93 : vector<8xf32> to vector<8x1xf32>
    %95 = vector.broadcast %94 : vector<8x1xf32> to vector<8x8xf32>
    %96 = arith.subf %92, %95 : vector<8x8xf32>
    %97 = math.exp %96 : vector<8x8xf32>
    %cst_34 = arith.constant dense<0.000000e+00> : vector<8xf32>
    %98 = vector.multi_reduction <add>, %97, %cst_34 [1] : vector<8x8xf32> to vector<8xf32>
    %99 = vector.shape_cast %98 : vector<8xf32> to vector<8x1xf32>
    %100 = vector.broadcast %99 : vector<8x1xf32> to vector<8x8xf32>
    %101 = arith.divf %97, %100 : vector<8x8xf32>
    %102 = arith.truncf %101 : vector<8x8xf32> to vector<8x8xbf16>
    %cst_35 = arith.constant dense<0.000000e+00> : vector<8x8xf32>
    %103 = tpu.matmul %102, %89, %cst_35 {dimension_numbers = #tpu.dot_dimension_numbers<[1], [0], [0], [1], [0, 0, 1, 1], [], []>} : vector<8x8xbf16>, vector<8x8xbf16>, vector<8x8xf32> -> vector<8x8xf32>
    %c0_36 = arith.constant 0 : index
    %c16 = arith.constant 16 : index
    %104 = vector.load %arg5[%c0_36, %c16] : memref<16x32xf32, #tpu.memory_space<vmem>>, vector<8x8xf32>
    tpu.vector_store %arg5[%c0_36, %c16], %103 {strides = array<i32>} : memref<16x32xf32, #tpu.memory_space<vmem>>, vector<8x8xf32>,
    %105 = vector.extract_strided_slice %41 {offsets = [0, 24], sizes = [8, 8], strides = [1, 1]} : vector<16x96xf32> to vector<8x8xf32>
    %106 = arith.truncf %105 : vector<8x8xf32> to vector<8x8xbf16>
    %107 = vector.extract_strided_slice %41 {offsets = [0, 56], sizes = [8, 8], strides = [1, 1]} : vector<16x96xf32> to vector<8x8xf32>
    %108 = arith.truncf %107 : vector<8x8xf32> to vector<8x8xbf16>
    %109 = vector.extract_strided_slice %41 {offsets = [0, 88], sizes = [8, 8], strides = [1, 1]} : vector<16x96xf32> to vector<8x8xf32>
    %110 = arith.truncf %109 : vector<8x8xf32> to vector<8x8xbf16>
    %cst_37 = arith.constant dense<0.000000e+00> : vector<8x8xf32>
    %111 = tpu.matmul %106, %108, %cst_37 {dimension_numbers = #tpu.dot_dimension_numbers<[1], [1], [0], [0], [0, 0, 1, 0], [], []>} : vector<8x8xbf16>, vector<8x8xbf16>, vector<8x8xf32> -> vector<8x8xf32>
    %cst_38 = arith.constant 0.353553385 : f32
    %112 = vector.broadcast %cst_38 : f32 to vector<8x8xf32>
    %113 = arith.mulf %111, %112 : vector<8x8xf32>
    %cst_39 = arith.constant dense<0xFF800000> : vector<8xf32>
    %114 = vector.multi_reduction <maximumf>, %113, %cst_39 [1] : vector<8x8xf32> to vector<8xf32>
    %115 = vector.shape_cast %114 : vector<8xf32> to vector<8x1xf32>
    %116 = vector.broadcast %115 : vector<8x1xf32> to vector<8x8xf32>
    %117 = arith.subf %113, %116 : vector<8x8xf32>
    %118 = math.exp %117 : vector<8x8xf32>
    %cst_40 = arith.constant dense<0.000000e+00> : vector<8xf32>
    %119 = vector.multi_reduction <add>, %118, %cst_40 [1] : vector<8x8xf32> to vector<8xf32>
    %120 = vector.shape_cast %119 : vector<8xf32> to vector<8x1xf32>
    %121 = vector.broadcast %120 : vector<8x1xf32> to vector<8x8xf32>
    %122 = arith.divf %118, %121 : vector<8x8xf32>
    %123 = arith.truncf %122 : vector<8x8xf32> to vector<8x8xbf16>
    %cst_41 = arith.constant dense<0.000000e+00> : vector<8x8xf32>
    %124 = tpu.matmul %123, %110, %cst_41 {dimension_numbers = #tpu.dot_dimension_numbers<[1], [0], [0], [1], [0, 0, 1, 1], [], []>} : vector<8x8xbf16>, vector<8x8xbf16>, vector<8x8xf32> -> vector<8x8xf32>
    %c0_42 = arith.constant 0 : index
    %c24 = arith.constant 24 : index
    %125 = vector.load %arg5[%c0_42, %c24] : memref<16x32xf32, #tpu.memory_space<vmem>>, vector<8x8xf32>
    tpu.vector_store %arg5[%c0_42, %c24], %124 {strides = array<i32>} : memref<16x32xf32, #tpu.memory_space<vmem>>, vector<8x8xf32>,
    %126 = vector.extract_strided_slice %41 {offsets = [8, 0], sizes = [8, 8], strides = [1, 1]} : vector<16x96xf32> to vector<8x8xf32>
    %127 = arith.truncf %126 : vector<8x8xf32> to vector<8x8xbf16>
    %128 = vector.extract_strided_slice %41 {offsets = [8, 32], sizes = [8, 8], strides = [1, 1]} : vector<16x96xf32> to vector<8x8xf32>
    %129 = arith.truncf %128 : vector<8x8xf32> to vector<8x8xbf16>
    %130 = vector.extract_strided_slice %41 {offsets = [8, 64], sizes = [8, 8], strides = [1, 1]} : vector<16x96xf32> to vector<8x8xf32>
    %131 = arith.truncf %130 : vector<8x8xf32> to vector<8x8xbf16>
    %cst_43 = arith.constant dense<0.000000e+00> : vector<8x8xf32>
    %132 = tpu.matmul %127, %129, %cst_43 {dimension_numbers = #tpu.dot_dimension_numbers<[1], [1], [0], [0], [0, 0, 1, 0], [], []>} : vector<8x8xbf16>, vector<8x8xbf16>, vector<8x8xf32> -> vector<8x8xf32>
    %cst_44 = arith.constant 0.353553385 : f32
    %133 = vector.broadcast %cst_44 : f32 to vector<8x8xf32>
    %134 = arith.mulf %132, %133 : vector<8x8xf32>
    %cst_45 = arith.constant dense<0xFF800000> : vector<8xf32>
    %135 = vector.multi_reduction <maximumf>, %134, %cst_45 [1] : vector<8x8xf32> to vector<8xf32>
    %136 = vector.shape_cast %135 : vector<8xf32> to vector<8x1xf32>
    %137 = vector.broadcast %136 : vector<8x1xf32> to vector<8x8xf32>
    %138 = arith.subf %134, %137 : vector<8x8xf32>
    %139 = math.exp %138 : vector<8x8xf32>
    %cst_46 = arith.constant dense<0.000000e+00> : vector<8xf32>
    %140 = vector.multi_reduction <add>, %139, %cst_46 [1] : vector<8x8xf32> to vector<8xf32>
    %141 = vector.shape_cast %140 : vector<8xf32> to vector<8x1xf32>
    %142 = vector.broadcast %141 : vector<8x1xf32> to vector<8x8xf32>
    %143 = arith.divf %139, %142 : vector<8x8xf32>
    %144 = arith.truncf %143 : vector<8x8xf32> to vector<8x8xbf16>
    %cst_47 = arith.constant dense<0.000000e+00> : vector<8x8xf32>
    %145 = tpu.matmul %144, %131, %cst_47 {dimension_numbers = #tpu.dot_dimension_numbers<[1], [0], [0], [1], [0, 0, 1, 1], [], []>} : vector<8x8xbf16>, vector<8x8xbf16>, vector<8x8xf32> -> vector<8x8xf32>
    %c8_48 = arith.constant 8 : index
    %c0_49 = arith.constant 0 : index
    %146 = vector.load %arg5[%c8_48, %c0_49] : memref<16x32xf32, #tpu.memory_space<vmem>>, vector<8x8xf32>
    tpu.vector_store %arg5[%c8_48, %c0_49], %145 {strides = array<i32>} : memref<16x32xf32, #tpu.memory_space<vmem>>, vector<8x8xf32>,
    %147 = vector.extract_strided_slice %41 {offsets = [8, 8], sizes = [8, 8], strides = [1, 1]} : vector<16x96xf32> to vector<8x8xf32>
    %148 = arith.truncf %147 : vector<8x8xf32> to vector<8x8xbf16>
    %149 = vector.extract_strided_slice %41 {offsets = [8, 40], sizes = [8, 8], strides = [1, 1]} : vector<16x96xf32> to vector<8x8xf32>
    %150 = arith.truncf %149 : vector<8x8xf32> to vector<8x8xbf16>
    %151 = vector.extract_strided_slice %41 {offsets = [8, 72], sizes = [8, 8], strides = [1, 1]} : vector<16x96xf32> to vector<8x8xf32>
    %152 = arith.truncf %151 : vector<8x8xf32> to vector<8x8xbf16>
    %cst_50 = arith.constant dense<0.000000e+00> : vector<8x8xf32>
    %153 = tpu.matmul %148, %150, %cst_50 {dimension_numbers = #tpu.dot_dimension_numbers<[1], [1], [0], [0], [0, 0, 1, 0], [], []>} : vector<8x8xbf16>, vector<8x8xbf16>, vector<8x8xf32> -> vector<8x8xf32>
    %cst_51 = arith.constant 0.353553385 : f32
    %154 = vector.broadcast %cst_51 : f32 to vector<8x8xf32>
    %155 = arith.mulf %153, %154 : vector<8x8xf32>
    %cst_52 = arith.constant dense<0xFF800000> : vector<8xf32>
    %156 = vector.multi_reduction <maximumf>, %155, %cst_52 [1] : vector<8x8xf32> to vector<8xf32>
    %157 = vector.shape_cast %156 : vector<8xf32> to vector<8x1xf32>
    %158 = vector.broadcast %157 : vector<8x1xf32> to vector<8x8xf32>
    %159 = arith.subf %155, %158 : vector<8x8xf32>
    %160 = math.exp %159 : vector<8x8xf32>
    %cst_53 = arith.constant dense<0.000000e+00> : vector<8xf32>
    %161 = vector.multi_reduction <add>, %160, %cst_53 [1] : vector<8x8xf32> to vector<8xf32>
    %162 = vector.shape_cast %161 : vector<8xf32> to vector<8x1xf32>
    %163 = vector.broadcast %162 : vector<8x1xf32> to vector<8x8xf32>
    %164 = arith.divf %160, %163 : vector<8x8xf32>
    %165 = arith.truncf %164 : vector<8x8xf32> to vector<8x8xbf16>
    %cst_54 = arith.constant dense<0.000000e+00> : vector<8x8xf32>
    %166 = tpu.matmul %165, %152, %cst_54 {dimension_numbers = #tpu.dot_dimension_numbers<[1], [0], [0], [1], [0, 0, 1, 1], [], []>} : vector<8x8xbf16>, vector<8x8xbf16>, vector<8x8xf32> -> vector<8x8xf32>
    %c8_55 = arith.constant 8 : index
    %c8_56 = arith.constant 8 : index
    %167 = vector.load %arg5[%c8_55, %c8_56] : memref<16x32xf32, #tpu.memory_space<vmem>>, vector<8x8xf32>
    tpu.vector_store %arg5[%c8_55, %c8_56], %166 {strides = array<i32>} : memref<16x32xf32, #tpu.memory_space<vmem>>, vector<8x8xf32>,
    %168 = vector.extract_strided_slice %41 {offsets = [8, 16], sizes = [8, 8], strides = [1, 1]} : vector<16x96xf32> to vector<8x8xf32>
    %169 = arith.truncf %168 : vector<8x8xf32> to vector<8x8xbf16>
    %170 = vector.extract_strided_slice %41 {offsets = [8, 48], sizes = [8, 8], strides = [1, 1]} : vector<16x96xf32> to vector<8x8xf32>
    %171 = arith.truncf %170 : vector<8x8xf32> to vector<8x8xbf16>
    %172 = vector.extract_strided_slice %41 {offsets = [8, 80], sizes = [8, 8], strides = [1, 1]} : vector<16x96xf32> to vector<8x8xf32>
    %173 = arith.truncf %172 : vector<8x8xf32> to vector<8x8xbf16>
    %cst_57 = arith.constant dense<0.000000e+00> : vector<8x8xf32>
    %174 = tpu.matmul %169, %171, %cst_57 {dimension_numbers = #tpu.dot_dimension_numbers<[1], [1], [0], [0], [0, 0, 1, 0], [], []>} : vector<8x8xbf16>, vector<8x8xbf16>, vector<8x8xf32> -> vector<8x8xf32>
    %cst_58 = arith.constant 0.353553385 : f32
    %175 = vector.broadcast %cst_58 : f32 to vector<8x8xf32>
    %176 = arith.mulf %174, %175 : vector<8x8xf32>
    %cst_59 = arith.constant dense<0xFF800000> : vector<8xf32>
    %177 = vector.multi_reduction <maximumf>, %176, %cst_59 [1] : vector<8x8xf32> to vector<8xf32>
    %178 = vector.shape_cast %177 : vector<8xf32> to vector<8x1xf32>
    %179 = vector.broadcast %178 : vector<8x1xf32> to vector<8x8xf32>
    %180 = arith.subf %176, %179 : vector<8x8xf32>
    %181 = math.exp %180 : vector<8x8xf32>
    %cst_60 = arith.constant dense<0.000000e+00> : vector<8xf32>
    %182 = vector.multi_reduction <add>, %181, %cst_60 [1] : vector<8x8xf32> to vector<8xf32>
    %183 = vector.shape_cast %182 : vector<8xf32> to vector<8x1xf32>
    %184 = vector.broadcast %183 : vector<8x1xf32> to vector<8x8xf32>
    %185 = arith.divf %181, %184 : vector<8x8xf32>
    %186 = arith.truncf %185 : vector<8x8xf32> to vector<8x8xbf16>
    %cst_61 = arith.constant dense<0.000000e+00> : vector<8x8xf32>
    %187 = tpu.matmul %186, %173, %cst_61 {dimension_numbers = #tpu.dot_dimension_numbers<[1], [0], [0], [1], [0, 0, 1, 1], [], []>} : vector<8x8xbf16>, vector<8x8xbf16>, vector<8x8xf32> -> vector<8x8xf32>
    %c8_62 = arith.constant 8 : index
    %c16_63 = arith.constant 16 : index
    %188 = vector.load %arg5[%c8_62, %c16_63] : memref<16x32xf32, #tpu.memory_space<vmem>>, vector<8x8xf32>
    tpu.vector_store %arg5[%c8_62, %c16_63], %187 {strides = array<i32>} : memref<16x32xf32, #tpu.memory_space<vmem>>, vector<8x8xf32>,
    %189 = vector.extract_strided_slice %41 {offsets = [8, 24], sizes = [8, 8], strides = [1, 1]} : vector<16x96xf32> to vector<8x8xf32>
    %190 = arith.truncf %189 : vector<8x8xf32> to vector<8x8xbf16>
    %191 = vector.extract_strided_slice %41 {offsets = [8, 56], sizes = [8, 8], strides = [1, 1]} : vector<16x96xf32> to vector<8x8xf32>
    %192 = arith.truncf %191 : vector<8x8xf32> to vector<8x8xbf16>
    %193 = vector.extract_strided_slice %41 {offsets = [8, 88], sizes = [8, 8], strides = [1, 1]} : vector<16x96xf32> to vector<8x8xf32>
    %194 = arith.truncf %193 : vector<8x8xf32> to vector<8x8xbf16>
    %cst_64 = arith.constant dense<0.000000e+00> : vector<8x8xf32>
    %195 = tpu.matmul %190, %192, %cst_64 {dimension_numbers = #tpu.dot_dimension_numbers<[1], [1], [0], [0], [0, 0, 1, 0], [], []>} : vector<8x8xbf16>, vector<8x8xbf16>, vector<8x8xf32> -> vector<8x8xf32>
    %cst_65 = arith.constant 0.353553385 : f32
    %196 = vector.broadcast %cst_65 : f32 to vector<8x8xf32>
    %197 = arith.mulf %195, %196 : vector<8x8xf32>
    %cst_66 = arith.constant dense<0xFF800000> : vector<8xf32>
    %198 = vector.multi_reduction <maximumf>, %197, %cst_66 [1] : vector<8x8xf32> to vector<8xf32>
    %199 = vector.shape_cast %198 : vector<8xf32> to vector<8x1xf32>
    %200 = vector.broadcast %199 : vector<8x1xf32> to vector<8x8xf32>
    %201 = arith.subf %197, %200 : vector<8x8xf32>
    %202 = math.exp %201 : vector<8x8xf32>
    %cst_67 = arith.constant dense<0.000000e+00> : vector<8xf32>
    %203 = vector.multi_reduction <add>, %202, %cst_67 [1] : vector<8x8xf32> to vector<8xf32>
    %204 = vector.shape_cast %203 : vector<8xf32> to vector<8x1xf32>
    %205 = vector.broadcast %204 : vector<8x1xf32> to vector<8x8xf32>
    %206 = arith.divf %202, %205 : vector<8x8xf32>
    %207 = arith.truncf %206 : vector<8x8xf32> to vector<8x8xbf16>
    %cst_68 = arith.constant dense<0.000000e+00> : vector<8x8xf32>
    %208 = tpu.matmul %207, %194, %cst_68 {dimension_numbers = #tpu.dot_dimension_numbers<[1], [0], [0], [1], [0, 0, 1, 1], [], []>} : vector<8x8xbf16>, vector<8x8xbf16>, vector<8x8xf32> -> vector<8x8xf32>
    %c8_69 = arith.constant 8 : index
    %c24_70 = arith.constant 24 : index
    %209 = vector.load %arg5[%c8_69, %c24_70] : memref<16x32xf32, #tpu.memory_space<vmem>>, vector<8x8xf32>
    tpu.vector_store %arg5[%c8_69, %c24_70], %208 {strides = array<i32>} : memref<16x32xf32, #tpu.memory_space<vmem>>, vector<8x8xf32>,
    %c0_71 = arith.constant 0 : index
    %c0_72 = arith.constant 0 : index
    %210 = vector.load %arg5[%c0_71, %c0_72] : memref<16x32xf32, #tpu.memory_space<vmem>>, vector<16x32xf32>
    %211 = arith.truncf %210 : vector<16x32xf32> to vector<16x32xbf16>
    %cst_73 = arith.constant dense<0.000000e+00> : vector<16x32xf32>
    %212 = tpu.matmul %211, %13, %cst_73 {dimension_numbers = #tpu.dot_dimension_numbers<[1], [0], [0], [1], [0, 0, 1, 1], [], []>} : vector<16x32xbf16>, vector<32x32xbf16>, vector<16x32xf32> -> vector<16x32xf32>
    %213 = arith.addf %0, %212 : vector<16x32xf32>
    %214 = vector.broadcast %7 : vector<1x32xf32> to vector<16x32xf32>
    %215 = arith.addf %213, %214 : vector<16x32xf32>
    %cst_74 = arith.constant dense<0.000000e+00> : vector<16xf32>
    %216 = vector.multi_reduction <add>, %215, %cst_74 [1] : vector<16x32xf32> to vector<16xf32>
    %217 = vector.shape_cast %216 : vector<16xf32> to vector<16x1xf32>
    %cst_75 = arith.constant 3.200000e+01 : f32
    %218 = vector.broadcast %cst_75 : f32 to vector<16x1xf32>
    %219 = arith.divf %217, %218 : vector<16x1xf32>
    %220 = vector.broadcast %219 : vector<16x1xf32> to vector<16x32xf32>
    %221 = arith.subf %215, %220 : vector<16x32xf32>
    %222 = arith.mulf %221, %221 : vector<16x32xf32>
    %cst_76 = arith.constant dense<0.000000e+00> : vector<16xf32>
    %223 = vector.multi_reduction <add>, %222, %cst_76 [1] : vector<16x32xf32> to vector<16xf32>
    %224 = vector.shape_cast %223 : vector<16xf32> to vector<16x1xf32>
    %cst_77 = arith.constant 3.200000e+01 : f32
    %225 = vector.broadcast %cst_77 : f32 to vector<16x1xf32>
    %226 = arith.divf %224, %225 : vector<16x1xf32>
    %227 = vector.broadcast %219 : vector<16x1xf32> to vector<16x32xf32>
    %228 = arith.subf %215, %227 : vector<16x32xf32>
    %cst_78 = arith.constant 9.99999974E-6 : f32
    %229 = vector.broadcast %cst_78 : f32 to vector<16x1xf32>
    %230 = arith.addf %226, %229 : vector<16x1xf32>
    %231 = math.rsqrt %230 : vector<16x1xf32>
    %232 = vector.broadcast %231 : vector<16x1xf32> to vector<16x32xf32>
    %233 = arith.mulf %228, %232 : vector<16x32xf32>
    %234 = vector.broadcast %5 : vector<1x32xf32> to vector<16x32xf32>
    %235 = arith.mulf %233, %234 : vector<16x32xf32>
    %236 = vector.broadcast %6 : vector<1x32xf32> to vector<16x32xf32>
    %237 = arith.addf %235, %236 : vector<16x32xf32>
    %238 = arith.truncf %237 : vector<16x32xf32> to vector<16x32xbf16>
    %cst_79 = arith.constant dense<0.000000e+00> : vector<16x64xf32>
    %239 = tpu.matmul %238, %15, %cst_79 {dimension_numbers = #tpu.dot_dimension_numbers<[1], [0], [0], [1], [0, 0, 1, 1], [], []>} : vector<16x32xbf16>, vector<32x64xbf16>, vector<16x64xf32> -> vector<16x64xf32>
    %240 = vector.broadcast %9 : vector<1x64xf32> to vector<16x64xf32>
    %241 = arith.addf %239, %240 : vector<16x64xf32>
    %cst_80 = arith.constant 0.000000e+00 : f32
    %242 = vector.broadcast %cst_80 : f32 to vector<16x64xf32>
    %243 = arith.maximumf %241, %242 : vector<16x64xf32>
    %244 = arith.truncf %243 : vector<16x64xf32> to vector<16x64xbf16>
    %cst_81 = arith.constant dense<0.000000e+00> : vector<16x32xf32>
    %245 = tpu.matmul %244, %17, %cst_81 {dimension_numbers = #tpu.dot_dimension_numbers<[1], [0], [0], [1], [0, 0, 1, 1], [], []>} : vector<16x64xbf16>, vector<64x32xbf16>, vector<16x32xf32> -> vector<16x32xf32>
    %246 = arith.addf %215, %245 : vector<16x32xf32>
    %247 = vector.broadcast %8 : vector<1x32xf32> to vector<16x32xf32>
    %248 = arith.addf %246, %247 : vector<16x32xf32>
    %c1 = arith.constant 1 : index
    %c0_82 = arith.constant 0 : index
    %c0_83 = arith.constant 0 : index
    %249 = vector.load %arg3[%c1, %c0_82, %c0_83] : memref<2x8x128xf32, #tpu.memory_space<vmem>>, vector<1x8x128xf32>
    %250 = vector.shape_cast %249 : vector<1x8x128xf32> to vector<8x128xf32>
    %251 = vector.extract_strided_slice %250 {offsets = [0, 0], sizes = [1, 32], strides = [1, 1]} : vector<8x128xf32> to vector<1x32xf32>
    %252 = vector.extract_strided_slice %250 {offsets = [1, 0], sizes = [1, 32], strides = [1, 1]} : vector<8x128xf32> to vector<1x32xf32>
    %253 = vector.extract_strided_slice %250 {offsets = [3, 0], sizes = [1, 32], strides = [1, 1]} : vector<8x128xf32> to vector<1x32xf32>
    %254 = vector.extract_strided_slice %250 {offsets = [4, 0], sizes = [1, 32], strides = [1, 1]} : vector<8x128xf32> to vector<1x32xf32>
    %255 = vector.extract_strided_slice %250 {offsets = [2, 0], sizes = [1, 32], strides = [1, 1]} : vector<8x128xf32> to vector<1x32xf32>
    %256 = vector.extract_strided_slice %250 {offsets = [5, 0], sizes = [1, 32], strides = [1, 1]} : vector<8x128xf32> to vector<1x32xf32>
    %257 = vector.extract_strided_slice %250 {offsets = [6, 0], sizes = [1, 64], strides = [1, 1]} : vector<8x128xf32> to vector<1x64xf32>
    %c1_84 = arith.constant 1 : index
    %c0_85 = arith.constant 0 : index
    %c0_86 = arith.constant 0 : index
    %258 = vector.load %arg2[%c1_84, %c0_85, %c0_86] : memref<2x160x128xbf16, #tpu.memory_space<vmem>>, vector<1x32x96xbf16>
    %259 = vector.shape_cast %258 : vector<1x32x96xbf16> to vector<32x96xbf16>
    %c1_87 = arith.constant 1 : index
    %c32_88 = arith.constant 32 : index
    %c0_89 = arith.constant 0 : index
    %260 = vector.load %arg2[%c1_87, %c32_88, %c0_89] : memref<2x160x128xbf16, #tpu.memory_space<vmem>>, vector<1x32x32xbf16>
    %261 = vector.shape_cast %260 : vector<1x32x32xbf16> to vector<32x32xbf16>
    %c1_90 = arith.constant 1 : index
    %c64_91 = arith.constant 64 : index
    %c0_92 = arith.constant 0 : index
    %262 = vector.load %arg2[%c1_90, %c64_91, %c0_92] : memref<2x160x128xbf16, #tpu.memory_space<vmem>>, vector<1x32x64xbf16>
    %263 = vector.shape_cast %262 : vector<1x32x64xbf16> to vector<32x64xbf16>
    %c1_93 = arith.constant 1 : index
    %c96_94 = arith.constant 96 : index
    %c0_95 = arith.constant 0 : index
    %264 = vector.load %arg2[%c1_93, %c96_94, %c0_95] : memref<2x160x128xbf16, #tpu.memory_space<vmem>>, vector<1x64x32xbf16>
    %265 = vector.shape_cast %264 : vector<1x64x32xbf16> to vector<64x32xbf16>
    %cst_96 = arith.constant dense<0.000000e+00> : vector<16xf32>
    %266 = vector.multi_reduction <add>, %248, %cst_96 [1] : vector<16x32xf32> to vector<16xf32>
    %267 = vector.shape_cast %266 : vector<16xf32> to vector<16x1xf32>
    %cst_97 = arith.constant 3.200000e+01 : f32
    %268 = vector.broadcast %cst_97 : f32 to vector<16x1xf32>
    %269 = arith.divf %267, %268 : vector<16x1xf32>
    %270 = vector.broadcast %269 : vector<16x1xf32> to vector<16x32xf32>
    %271 = arith.subf %248, %270 : vector<16x32xf32>
    %272 = arith.mulf %271, %271 : vector<16x32xf32>
    %cst_98 = arith.constant dense<0.000000e+00> : vector<16xf32>
    %273 = vector.multi_reduction <add>, %272, %cst_98 [1] : vector<16x32xf32> to vector<16xf32>
    %274 = vector.shape_cast %273 : vector<16xf32> to vector<16x1xf32>
    %cst_99 = arith.constant 3.200000e+01 : f32
    %275 = vector.broadcast %cst_99 : f32 to vector<16x1xf32>
    %276 = arith.divf %274, %275 : vector<16x1xf32>
    %277 = vector.broadcast %269 : vector<16x1xf32> to vector<16x32xf32>
    %278 = arith.subf %248, %277 : vector<16x32xf32>
    %cst_100 = arith.constant 9.99999974E-6 : f32
    %279 = vector.broadcast %cst_100 : f32 to vector<16x1xf32>
    %280 = arith.addf %276, %279 : vector<16x1xf32>
    %281 = math.rsqrt %280 : vector<16x1xf32>
    %282 = vector.broadcast %281 : vector<16x1xf32> to vector<16x32xf32>
    %283 = arith.mulf %278, %282 : vector<16x32xf32>
    %284 = vector.broadcast %251 : vector<1x32xf32> to vector<16x32xf32>
    %285 = arith.mulf %283, %284 : vector<16x32xf32>
    %286 = vector.broadcast %252 : vector<1x32xf32> to vector<16x32xf32>
    %287 = arith.addf %285, %286 : vector<16x32xf32>
    %288 = arith.truncf %287 : vector<16x32xf32> to vector<16x32xbf16>
    %cst_101 = arith.constant dense<0.000000e+00> : vector<16x96xf32>
    %289 = tpu.matmul %288, %259, %cst_101 {dimension_numbers = #tpu.dot_dimension_numbers<[1], [0], [0], [1], [0, 0, 1, 1], [], []>} : vector<16x32xbf16>, vector<32x96xbf16>, vector<16x96xf32> -> vector<16x96xf32>
    %290 = vector.extract_strided_slice %289 {offsets = [0, 0], sizes = [8, 8], strides = [1, 1]} : vector<16x96xf32> to vector<8x8xf32>
    %291 = arith.truncf %290 : vector<8x8xf32> to vector<8x8xbf16>
    %292 = vector.extract_strided_slice %289 {offsets = [0, 32], sizes = [8, 8], strides = [1, 1]} : vector<16x96xf32> to vector<8x8xf32>
    %293 = arith.truncf %292 : vector<8x8xf32> to vector<8x8xbf16>
    %294 = vector.extract_strided_slice %289 {offsets = [0, 64], sizes = [8, 8], strides = [1, 1]} : vector<16x96xf32> to vector<8x8xf32>
    %295 = arith.truncf %294 : vector<8x8xf32> to vector<8x8xbf16>
    %cst_102 = arith.constant dense<0.000000e+00> : vector<8x8xf32>
    %296 = tpu.matmul %291, %293, %cst_102 {dimension_numbers = #tpu.dot_dimension_numbers<[1], [1], [0], [0], [0, 0, 1, 0], [], []>} : vector<8x8xbf16>, vector<8x8xbf16>, vector<8x8xf32> -> vector<8x8xf32>
    %cst_103 = arith.constant 0.353553385 : f32
    %297 = vector.broadcast %cst_103 : f32 to vector<8x8xf32>
    %298 = arith.mulf %296, %297 : vector<8x8xf32>
    %cst_104 = arith.constant dense<0xFF800000> : vector<8xf32>
    %299 = vector.multi_reduction <maximumf>, %298, %cst_104 [1] : vector<8x8xf32> to vector<8xf32>
    %300 = vector.shape_cast %299 : vector<8xf32> to vector<8x1xf32>
    %301 = vector.broadcast %300 : vector<8x1xf32> to vector<8x8xf32>
    %302 = arith.subf %298, %301 : vector<8x8xf32>
    %303 = math.exp %302 : vector<8x8xf32>
    %cst_105 = arith.constant dense<0.000000e+00> : vector<8xf32>
    %304 = vector.multi_reduction <add>, %303, %cst_105 [1] : vector<8x8xf32> to vector<8xf32>
    %305 = vector.shape_cast %304 : vector<8xf32> to vector<8x1xf32>
    %306 = vector.broadcast %305 : vector<8x1xf32> to vector<8x8xf32>
    %307 = arith.divf %303, %306 : vector<8x8xf32>
    %308 = arith.truncf %307 : vector<8x8xf32> to vector<8x8xbf16>
    %cst_106 = arith.constant dense<0.000000e+00> : vector<8x8xf32>
    %309 = tpu.matmul %308, %295, %cst_106 {dimension_numbers = #tpu.dot_dimension_numbers<[1], [0], [0], [1], [0, 0, 1, 1], [], []>} : vector<8x8xbf16>, vector<8x8xbf16>, vector<8x8xf32> -> vector<8x8xf32>
    %c0_107 = arith.constant 0 : index
    %c0_108 = arith.constant 0 : index
    %310 = vector.load %arg5[%c0_107, %c0_108] : memref<16x32xf32, #tpu.memory_space<vmem>>, vector<8x8xf32>
    tpu.vector_store %arg5[%c0_107, %c0_108], %309 {strides = array<i32>} : memref<16x32xf32, #tpu.memory_space<vmem>>, vector<8x8xf32>,
    %311 = vector.extract_strided_slice %289 {offsets = [0, 8], sizes = [8, 8], strides = [1, 1]} : vector<16x96xf32> to vector<8x8xf32>
    %312 = arith.truncf %311 : vector<8x8xf32> to vector<8x8xbf16>
    %313 = vector.extract_strided_slice %289 {offsets = [0, 40], sizes = [8, 8], strides = [1, 1]} : vector<16x96xf32> to vector<8x8xf32>
    %314 = arith.truncf %313 : vector<8x8xf32> to vector<8x8xbf16>
    %315 = vector.extract_strided_slice %289 {offsets = [0, 72], sizes = [8, 8], strides = [1, 1]} : vector<16x96xf32> to vector<8x8xf32>
    %316 = arith.truncf %315 : vector<8x8xf32> to vector<8x8xbf16>
    %cst_109 = arith.constant dense<0.000000e+00> : vector<8x8xf32>
    %317 = tpu.matmul %312, %314, %cst_109 {dimension_numbers = #tpu.dot_dimension_numbers<[1], [1], [0], [0], [0, 0, 1, 0], [], []>} : vector<8x8xbf16>, vector<8x8xbf16>, vector<8x8xf32> -> vector<8x8xf32>
    %cst_110 = arith.constant 0.353553385 : f32
    %318 = vector.broadcast %cst_110 : f32 to vector<8x8xf32>
    %319 = arith.mulf %317, %318 : vector<8x8xf32>
    %cst_111 = arith.constant dense<0xFF800000> : vector<8xf32>
    %320 = vector.multi_reduction <maximumf>, %319, %cst_111 [1] : vector<8x8xf32> to vector<8xf32>
    %321 = vector.shape_cast %320 : vector<8xf32> to vector<8x1xf32>
    %322 = vector.broadcast %321 : vector<8x1xf32> to vector<8x8xf32>
    %323 = arith.subf %319, %322 : vector<8x8xf32>
    %324 = math.exp %323 : vector<8x8xf32>
    %cst_112 = arith.constant dense<0.000000e+00> : vector<8xf32>
    %325 = vector.multi_reduction <add>, %324, %cst_112 [1] : vector<8x8xf32> to vector<8xf32>
    %326 = vector.shape_cast %325 : vector<8xf32> to vector<8x1xf32>
    %327 = vector.broadcast %326 : vector<8x1xf32> to vector<8x8xf32>
    %328 = arith.divf %324, %327 : vector<8x8xf32>
    %329 = arith.truncf %328 : vector<8x8xf32> to vector<8x8xbf16>
    %cst_113 = arith.constant dense<0.000000e+00> : vector<8x8xf32>
    %330 = tpu.matmul %329, %316, %cst_113 {dimension_numbers = #tpu.dot_dimension_numbers<[1], [0], [0], [1], [0, 0, 1, 1], [], []>} : vector<8x8xbf16>, vector<8x8xbf16>, vector<8x8xf32> -> vector<8x8xf32>
    %c0_114 = arith.constant 0 : index
    %c8_115 = arith.constant 8 : index
    %331 = vector.load %arg5[%c0_114, %c8_115] : memref<16x32xf32, #tpu.memory_space<vmem>>, vector<8x8xf32>
    tpu.vector_store %arg5[%c0_114, %c8_115], %330 {strides = array<i32>} : memref<16x32xf32, #tpu.memory_space<vmem>>, vector<8x8xf32>,
    %332 = vector.extract_strided_slice %289 {offsets = [0, 16], sizes = [8, 8], strides = [1, 1]} : vector<16x96xf32> to vector<8x8xf32>
    %333 = arith.truncf %332 : vector<8x8xf32> to vector<8x8xbf16>
    %334 = vector.extract_strided_slice %289 {offsets = [0, 48], sizes = [8, 8], strides = [1, 1]} : vector<16x96xf32> to vector<8x8xf32>
    %335 = arith.truncf %334 : vector<8x8xf32> to vector<8x8xbf16>
    %336 = vector.extract_strided_slice %289 {offsets = [0, 80], sizes = [8, 8], strides = [1, 1]} : vector<16x96xf32> to vector<8x8xf32>
    %337 = arith.truncf %336 : vector<8x8xf32> to vector<8x8xbf16>
    %cst_116 = arith.constant dense<0.000000e+00> : vector<8x8xf32>
    %338 = tpu.matmul %333, %335, %cst_116 {dimension_numbers = #tpu.dot_dimension_numbers<[1], [1], [0], [0], [0, 0, 1, 0], [], []>} : vector<8x8xbf16>, vector<8x8xbf16>, vector<8x8xf32> -> vector<8x8xf32>
    %cst_117 = arith.constant 0.353553385 : f32
    %339 = vector.broadcast %cst_117 : f32 to vector<8x8xf32>
    %340 = arith.mulf %338, %339 : vector<8x8xf32>
    %cst_118 = arith.constant dense<0xFF800000> : vector<8xf32>
    %341 = vector.multi_reduction <maximumf>, %340, %cst_118 [1] : vector<8x8xf32> to vector<8xf32>
    %342 = vector.shape_cast %341 : vector<8xf32> to vector<8x1xf32>
    %343 = vector.broadcast %342 : vector<8x1xf32> to vector<8x8xf32>
    %344 = arith.subf %340, %343 : vector<8x8xf32>
    %345 = math.exp %344 : vector<8x8xf32>
    %cst_119 = arith.constant dense<0.000000e+00> : vector<8xf32>
    %346 = vector.multi_reduction <add>, %345, %cst_119 [1] : vector<8x8xf32> to vector<8xf32>
    %347 = vector.shape_cast %346 : vector<8xf32> to vector<8x1xf32>
    %348 = vector.broadcast %347 : vector<8x1xf32> to vector<8x8xf32>
    %349 = arith.divf %345, %348 : vector<8x8xf32>
    %350 = arith.truncf %349 : vector<8x8xf32> to vector<8x8xbf16>
    %cst_120 = arith.constant dense<0.000000e+00> : vector<8x8xf32>
    %351 = tpu.matmul %350, %337, %cst_120 {dimension_numbers = #tpu.dot_dimension_numbers<[1], [0], [0], [1], [0, 0, 1, 1], [], []>} : vector<8x8xbf16>, vector<8x8xbf16>, vector<8x8xf32> -> vector<8x8xf32>
    %c0_121 = arith.constant 0 : index
    %c16_122 = arith.constant 16 : index
    %352 = vector.load %arg5[%c0_121, %c16_122] : memref<16x32xf32, #tpu.memory_space<vmem>>, vector<8x8xf32>
    tpu.vector_store %arg5[%c0_121, %c16_122], %351 {strides = array<i32>} : memref<16x32xf32, #tpu.memory_space<vmem>>, vector<8x8xf32>,
    %353 = vector.extract_strided_slice %289 {offsets = [0, 24], sizes = [8, 8], strides = [1, 1]} : vector<16x96xf32> to vector<8x8xf32>
    %354 = arith.truncf %353 : vector<8x8xf32> to vector<8x8xbf16>
    %355 = vector.extract_strided_slice %289 {offsets = [0, 56], sizes = [8, 8], strides = [1, 1]} : vector<16x96xf32> to vector<8x8xf32>
    %356 = arith.truncf %355 : vector<8x8xf32> to vector<8x8xbf16>
    %357 = vector.extract_strided_slice %289 {offsets = [0, 88], sizes = [8, 8], strides = [1, 1]} : vector<16x96xf32> to vector<8x8xf32>
    %358 = arith.truncf %357 : vector<8x8xf32> to vector<8x8xbf16>
    %cst_123 = arith.constant dense<0.000000e+00> : vector<8x8xf32>
    %359 = tpu.matmul %354, %356, %cst_123 {dimension_numbers = #tpu.dot_dimension_numbers<[1], [1], [0], [0], [0, 0, 1, 0], [], []>} : vector<8x8xbf16>, vector<8x8xbf16>, vector<8x8xf32> -> vector<8x8xf32>
    %cst_124 = arith.constant 0.353553385 : f32
    %360 = vector.broadcast %cst_124 : f32 to vector<8x8xf32>
    %361 = arith.mulf %359, %360 : vector<8x8xf32>
    %cst_125 = arith.constant dense<0xFF800000> : vector<8xf32>
    %362 = vector.multi_reduction <maximumf>, %361, %cst_125 [1] : vector<8x8xf32> to vector<8xf32>
    %363 = vector.shape_cast %362 : vector<8xf32> to vector<8x1xf32>
    %364 = vector.broadcast %363 : vector<8x1xf32> to vector<8x8xf32>
    %365 = arith.subf %361, %364 : vector<8x8xf32>
    %366 = math.exp %365 : vector<8x8xf32>
    %cst_126 = arith.constant dense<0.000000e+00> : vector<8xf32>
    %367 = vector.multi_reduction <add>, %366, %cst_126 [1] : vector<8x8xf32> to vector<8xf32>
    %368 = vector.shape_cast %367 : vector<8xf32> to vector<8x1xf32>
    %369 = vector.broadcast %368 : vector<8x1xf32> to vector<8x8xf32>
    %370 = arith.divf %366, %369 : vector<8x8xf32>
    %371 = arith.truncf %370 : vector<8x8xf32> to vector<8x8xbf16>
    %cst_127 = arith.constant dense<0.000000e+00> : vector<8x8xf32>
    %372 = tpu.matmul %371, %358, %cst_127 {dimension_numbers = #tpu.dot_dimension_numbers<[1], [0], [0], [1], [0, 0, 1, 1], [], []>} : vector<8x8xbf16>, vector<8x8xbf16>, vector<8x8xf32> -> vector<8x8xf32>
    %c0_128 = arith.constant 0 : index
    %c24_129 = arith.constant 24 : index
    %373 = vector.load %arg5[%c0_128, %c24_129] : memref<16x32xf32, #tpu.memory_space<vmem>>, vector<8x8xf32>
    tpu.vector_store %arg5[%c0_128, %c24_129], %372 {strides = array<i32>} : memref<16x32xf32, #tpu.memory_space<vmem>>, vector<8x8xf32>,
    %374 = vector.extract_strided_slice %289 {offsets = [8, 0], sizes = [8, 8], strides = [1, 1]} : vector<16x96xf32> to vector<8x8xf32>
    %375 = arith.truncf %374 : vector<8x8xf32> to vector<8x8xbf16>
    %376 = vector.extract_strided_slice %289 {offsets = [8, 32], sizes = [8, 8], strides = [1, 1]} : vector<16x96xf32> to vector<8x8xf32>
    %377 = arith.truncf %376 : vector<8x8xf32> to vector<8x8xbf16>
    %378 = vector.extract_strided_slice %289 {offsets = [8, 64], sizes = [8, 8], strides = [1, 1]} : vector<16x96xf32> to vector<8x8xf32>
    %379 = arith.truncf %378 : vector<8x8xf32> to vector<8x8xbf16>
    %cst_130 = arith.constant dense<0.000000e+00> : vector<8x8xf32>
    %380 = tpu.matmul %375, %377, %cst_130 {dimension_numbers = #tpu.dot_dimension_numbers<[1], [1], [0], [0], [0, 0, 1, 0], [], []>} : vector<8x8xbf16>, vector<8x8xbf16>, vector<8x8xf32> -> vector<8x8xf32>
    %cst_131 = arith.constant 0.353553385 : f32
    %381 = vector.broadcast %cst_131 : f32 to vector<8x8xf32>
    %382 = arith.mulf %380, %381 : vector<8x8xf32>
    %cst_132 = arith.constant dense<0xFF800000> : vector<8xf32>
    %383 = vector.multi_reduction <maximumf>, %382, %cst_132 [1] : vector<8x8xf32> to vector<8xf32>
    %384 = vector.shape_cast %383 : vector<8xf32> to vector<8x1xf32>
    %385 = vector.broadcast %384 : vector<8x1xf32> to vector<8x8xf32>
    %386 = arith.subf %382, %385 : vector<8x8xf32>
    %387 = math.exp %386 : vector<8x8xf32>
    %cst_133 = arith.constant dense<0.000000e+00> : vector<8xf32>
    %388 = vector.multi_reduction <add>, %387, %cst_133 [1] : vector<8x8xf32> to vector<8xf32>
    %389 = vector.shape_cast %388 : vector<8xf32> to vector<8x1xf32>
    %390 = vector.broadcast %389 : vector<8x1xf32> to vector<8x8xf32>
    %391 = arith.divf %387, %390 : vector<8x8xf32>
    %392 = arith.truncf %391 : vector<8x8xf32> to vector<8x8xbf16>
    %cst_134 = arith.constant dense<0.000000e+00> : vector<8x8xf32>
    %393 = tpu.matmul %392, %379, %cst_134 {dimension_numbers = #tpu.dot_dimension_numbers<[1], [0], [0], [1], [0, 0, 1, 1], [], []>} : vector<8x8xbf16>, vector<8x8xbf16>, vector<8x8xf32> -> vector<8x8xf32>
    %c8_135 = arith.constant 8 : index
    %c0_136 = arith.constant 0 : index
    %394 = vector.load %arg5[%c8_135, %c0_136] : memref<16x32xf32, #tpu.memory_space<vmem>>, vector<8x8xf32>
    tpu.vector_store %arg5[%c8_135, %c0_136], %393 {strides = array<i32>} : memref<16x32xf32, #tpu.memory_space<vmem>>, vector<8x8xf32>,
    %395 = vector.extract_strided_slice %289 {offsets = [8, 8], sizes = [8, 8], strides = [1, 1]} : vector<16x96xf32> to vector<8x8xf32>
    %396 = arith.truncf %395 : vector<8x8xf32> to vector<8x8xbf16>
    %397 = vector.extract_strided_slice %289 {offsets = [8, 40], sizes = [8, 8], strides = [1, 1]} : vector<16x96xf32> to vector<8x8xf32>
    %398 = arith.truncf %397 : vector<8x8xf32> to vector<8x8xbf16>
    %399 = vector.extract_strided_slice %289 {offsets = [8, 72], sizes = [8, 8], strides = [1, 1]} : vector<16x96xf32> to vector<8x8xf32>
    %400 = arith.truncf %399 : vector<8x8xf32> to vector<8x8xbf16>
    %cst_137 = arith.constant dense<0.000000e+00> : vector<8x8xf32>
    %401 = tpu.matmul %396, %398, %cst_137 {dimension_numbers = #tpu.dot_dimension_numbers<[1], [1], [0], [0], [0, 0, 1, 0], [], []>} : vector<8x8xbf16>, vector<8x8xbf16>, vector<8x8xf32> -> vector<8x8xf32>
    %cst_138 = arith.constant 0.353553385 : f32
    %402 = vector.broadcast %cst_138 : f32 to vector<8x8xf32>
    %403 = arith.mulf %401, %402 : vector<8x8xf32>
    %cst_139 = arith.constant dense<0xFF800000> : vector<8xf32>
    %404 = vector.multi_reduction <maximumf>, %403, %cst_139 [1] : vector<8x8xf32> to vector<8xf32>
    %405 = vector.shape_cast %404 : vector<8xf32> to vector<8x1xf32>
    %406 = vector.broadcast %405 : vector<8x1xf32> to vector<8x8xf32>
    %407 = arith.subf %403, %406 : vector<8x8xf32>
    %408 = math.exp %407 : vector<8x8xf32>
    %cst_140 = arith.constant dense<0.000000e+00> : vector<8xf32>
    %409 = vector.multi_reduction <add>, %408, %cst_140 [1] : vector<8x8xf32> to vector<8xf32>
    %410 = vector.shape_cast %409 : vector<8xf32> to vector<8x1xf32>
    %411 = vector.broadcast %410 : vector<8x1xf32> to vector<8x8xf32>
    %412 = arith.divf %408, %411 : vector<8x8xf32>
    %413 = arith.truncf %412 : vector<8x8xf32> to vector<8x8xbf16>
    %cst_141 = arith.constant dense<0.000000e+00> : vector<8x8xf32>
    %414 = tpu.matmul %413, %400, %cst_141 {dimension_numbers = #tpu.dot_dimension_numbers<[1], [0], [0], [1], [0, 0, 1, 1], [], []>} : vector<8x8xbf16>, vector<8x8xbf16>, vector<8x8xf32> -> vector<8x8xf32>
    %c8_142 = arith.constant 8 : index
    %c8_143 = arith.constant 8 : index
    %415 = vector.load %arg5[%c8_142, %c8_143] : memref<16x32xf32, #tpu.memory_space<vmem>>, vector<8x8xf32>
    tpu.vector_store %arg5[%c8_142, %c8_143], %414 {strides = array<i32>} : memref<16x32xf32, #tpu.memory_space<vmem>>, vector<8x8xf32>,
    %416 = vector.extract_strided_slice %289 {offsets = [8, 16], sizes = [8, 8], strides = [1, 1]} : vector<16x96xf32> to vector<8x8xf32>
    %417 = arith.truncf %416 : vector<8x8xf32> to vector<8x8xbf16>
    %418 = vector.extract_strided_slice %289 {offsets = [8, 48], sizes = [8, 8], strides = [1, 1]} : vector<16x96xf32> to vector<8x8xf32>
    %419 = arith.truncf %418 : vector<8x8xf32> to vector<8x8xbf16>
    %420 = vector.extract_strided_slice %289 {offsets = [8, 80], sizes = [8, 8], strides = [1, 1]} : vector<16x96xf32> to vector<8x8xf32>
    %421 = arith.truncf %420 : vector<8x8xf32> to vector<8x8xbf16>
    %cst_144 = arith.constant dense<0.000000e+00> : vector<8x8xf32>
    %422 = tpu.matmul %417, %419, %cst_144 {dimension_numbers = #tpu.dot_dimension_numbers<[1], [1], [0], [0], [0, 0, 1, 0], [], []>} : vector<8x8xbf16>, vector<8x8xbf16>, vector<8x8xf32> -> vector<8x8xf32>
    %cst_145 = arith.constant 0.353553385 : f32
    %423 = vector.broadcast %cst_145 : f32 to vector<8x8xf32>
    %424 = arith.mulf %422, %423 : vector<8x8xf32>
    %cst_146 = arith.constant dense<0xFF800000> : vector<8xf32>
    %425 = vector.multi_reduction <maximumf>, %424, %cst_146 [1] : vector<8x8xf32> to vector<8xf32>
    %426 = vector.shape_cast %425 : vector<8xf32> to vector<8x1xf32>
    %427 = vector.broadcast %426 : vector<8x1xf32> to vector<8x8xf32>
    %428 = arith.subf %424, %427 : vector<8x8xf32>
    %429 = math.exp %428 : vector<8x8xf32>
    %cst_147 = arith.constant dense<0.000000e+00> : vector<8xf32>
    %430 = vector.multi_reduction <add>, %429, %cst_147 [1] : vector<8x8xf32> to vector<8xf32>
    %431 = vector.shape_cast %430 : vector<8xf32> to vector<8x1xf32>
    %432 = vector.broadcast %431 : vector<8x1xf32> to vector<8x8xf32>
    %433 = arith.divf %429, %432 : vector<8x8xf32>
    %434 = arith.truncf %433 : vector<8x8xf32> to vector<8x8xbf16>
    %cst_148 = arith.constant dense<0.000000e+00> : vector<8x8xf32>
    %435 = tpu.matmul %434, %421, %cst_148 {dimension_numbers = #tpu.dot_dimension_numbers<[1], [0], [0], [1], [0, 0, 1, 1], [], []>} : vector<8x8xbf16>, vector<8x8xbf16>, vector<8x8xf32> -> vector<8x8xf32>
    %c8_149 = arith.constant 8 : index
    %c16_150 = arith.constant 16 : index
    %436 = vector.load %arg5[%c8_149, %c16_150] : memref<16x32xf32, #tpu.memory_space<vmem>>, vector<8x8xf32>
    tpu.vector_store %arg5[%c8_149, %c16_150], %435 {strides = array<i32>} : memref<16x32xf32, #tpu.memory_space<vmem>>, vector<8x8xf32>,
    %437 = vector.extract_strided_slice %289 {offsets = [8, 24], sizes = [8, 8], strides = [1, 1]} : vector<16x96xf32> to vector<8x8xf32>
    %438 = arith.truncf %437 : vector<8x8xf32> to vector<8x8xbf16>
    %439 = vector.extract_strided_slice %289 {offsets = [8, 56], sizes = [8, 8], strides = [1, 1]} : vector<16x96xf32> to vector<8x8xf32>
    %440 = arith.truncf %439 : vector<8x8xf32> to vector<8x8xbf16>
    %441 = vector.extract_strided_slice %289 {offsets = [8, 88], sizes = [8, 8], strides = [1, 1]} : vector<16x96xf32> to vector<8x8xf32>
    %442 = arith.truncf %441 : vector<8x8xf32> to vector<8x8xbf16>
    %cst_151 = arith.constant dense<0.000000e+00> : vector<8x8xf32>
    %443 = tpu.matmul %438, %440, %cst_151 {dimension_numbers = #tpu.dot_dimension_numbers<[1], [1], [0], [0], [0, 0, 1, 0], [], []>} : vector<8x8xbf16>, vector<8x8xbf16>, vector<8x8xf32> -> vector<8x8xf32>
    %cst_152 = arith.constant 0.353553385 : f32
    %444 = vector.broadcast %cst_152 : f32 to vector<8x8xf32>
    %445 = arith.mulf %443, %444 : vector<8x8xf32>
    %cst_153 = arith.constant dense<0xFF800000> : vector<8xf32>
    %446 = vector.multi_reduction <maximumf>, %445, %cst_153 [1] : vector<8x8xf32> to vector<8xf32>
    %447 = vector.shape_cast %446 : vector<8xf32> to vector<8x1xf32>
    %448 = vector.broadcast %447 : vector<8x1xf32> to vector<8x8xf32>
    %449 = arith.subf %445, %448 : vector<8x8xf32>
    %450 = math.exp %449 : vector<8x8xf32>
    %cst_154 = arith.constant dense<0.000000e+00> : vector<8xf32>
    %451 = vector.multi_reduction <add>, %450, %cst_154 [1] : vector<8x8xf32> to vector<8xf32>
    %452 = vector.shape_cast %451 : vector<8xf32> to vector<8x1xf32>
    %453 = vector.broadcast %452 : vector<8x1xf32> to vector<8x8xf32>
    %454 = arith.divf %450, %453 : vector<8x8xf32>
    %455 = arith.truncf %454 : vector<8x8xf32> to vector<8x8xbf16>
    %cst_155 = arith.constant dense<0.000000e+00> : vector<8x8xf32>
    %456 = tpu.matmul %455, %442, %cst_155 {dimension_numbers = #tpu.dot_dimension_numbers<[1], [0], [0], [1], [0, 0, 1, 1], [], []>} : vector<8x8xbf16>, vector<8x8xbf16>, vector<8x8xf32> -> vector<8x8xf32>
    %c8_156 = arith.constant 8 : index
    %c24_157 = arith.constant 24 : index
    %457 = vector.load %arg5[%c8_156, %c24_157] : memref<16x32xf32, #tpu.memory_space<vmem>>, vector<8x8xf32>
    tpu.vector_store %arg5[%c8_156, %c24_157], %456 {strides = array<i32>} : memref<16x32xf32, #tpu.memory_space<vmem>>, vector<8x8xf32>,
    %c0_158 = arith.constant 0 : index
    %c0_159 = arith.constant 0 : index
    %458 = vector.load %arg5[%c0_158, %c0_159] : memref<16x32xf32, #tpu.memory_space<vmem>>, vector<16x32xf32>
    %459 = arith.truncf %458 : vector<16x32xf32> to vector<16x32xbf16>
    %cst_160 = arith.constant dense<0.000000e+00> : vector<16x32xf32>
    %460 = tpu.matmul %459, %261, %cst_160 {dimension_numbers = #tpu.dot_dimension_numbers<[1], [0], [0], [1], [0, 0, 1, 1], [], []>} : vector<16x32xbf16>, vector<32x32xbf16>, vector<16x32xf32> -> vector<16x32xf32>
    %461 = arith.addf %248, %460 : vector<16x32xf32>
    %462 = vector.broadcast %255 : vector<1x32xf32> to vector<16x32xf32>
    %463 = arith.addf %461, %462 : vector<16x32xf32>
    %cst_161 = arith.constant dense<0.000000e+00> : vector<16xf32>
    %464 = vector.multi_reduction <add>, %463, %cst_161 [1] : vector<16x32xf32> to vector<16xf32>
    %465 = vector.shape_cast %464 : vector<16xf32> to vector<16x1xf32>
    %cst_162 = arith.constant 3.200000e+01 : f32
    %466 = vector.broadcast %cst_162 : f32 to vector<16x1xf32>
    %467 = arith.divf %465, %466 : vector<16x1xf32>
    %468 = vector.broadcast %467 : vector<16x1xf32> to vector<16x32xf32>
    %469 = arith.subf %463, %468 : vector<16x32xf32>
    %470 = arith.mulf %469, %469 : vector<16x32xf32>
    %cst_163 = arith.constant dense<0.000000e+00> : vector<16xf32>
    %471 = vector.multi_reduction <add>, %470, %cst_163 [1] : vector<16x32xf32> to vector<16xf32>
    %472 = vector.shape_cast %471 : vector<16xf32> to vector<16x1xf32>
    %cst_164 = arith.constant 3.200000e+01 : f32
    %473 = vector.broadcast %cst_164 : f32 to vector<16x1xf32>
    %474 = arith.divf %472, %473 : vector<16x1xf32>
    %475 = vector.broadcast %467 : vector<16x1xf32> to vector<16x32xf32>
    %476 = arith.subf %463, %475 : vector<16x32xf32>
    %cst_165 = arith.constant 9.99999974E-6 : f32
    %477 = vector.broadcast %cst_165 : f32 to vector<16x1xf32>
    %478 = arith.addf %474, %477 : vector<16x1xf32>
    %479 = math.rsqrt %478 : vector<16x1xf32>
    %480 = vector.broadcast %479 : vector<16x1xf32> to vector<16x32xf32>
    %481 = arith.mulf %476, %480 : vector<16x32xf32>
    %482 = vector.broadcast %253 : vector<1x32xf32> to vector<16x32xf32>
    %483 = arith.mulf %481, %482 : vector<16x32xf32>
    %484 = vector.broadcast %254 : vector<1x32xf32> to vector<16x32xf32>
    %485 = arith.addf %483, %484 : vector<16x32xf32>
    %486 = arith.truncf %485 : vector<16x32xf32> to vector<16x32xbf16>
    %cst_166 = arith.constant dense<0.000000e+00> : vector<16x64xf32>
    %487 = tpu.matmul %486, %263, %cst_166 {dimension_numbers = #tpu.dot_dimension_numbers<[1], [0], [0], [1], [0, 0, 1, 1], [], []>} : vector<16x32xbf16>, vector<32x64xbf16>, vector<16x64xf32> -> vector<16x64xf32>
    %488 = vector.broadcast %257 : vector<1x64xf32> to vector<16x64xf32>
    %489 = arith.addf %487, %488 : vector<16x64xf32>
    %cst_167 = arith.constant 0.000000e+00 : f32
    %490 = vector.broadcast %cst_167 : f32 to vector<16x64xf32>
    %491 = arith.maximumf %489, %490 : vector<16x64xf32>
    %492 = arith.truncf %491 : vector<16x64xf32> to vector<16x64xbf16>
    %cst_168 = arith.constant dense<0.000000e+00> : vector<16x32xf32>
    %493 = tpu.matmul %492, %265, %cst_168 {dimension_numbers = #tpu.dot_dimension_numbers<[1], [0], [0], [1], [0, 0, 1, 1], [], []>} : vector<16x64xbf16>, vector<64x32xbf16>, vector<16x32xf32> -> vector<16x32xf32>
    %494 = arith.addf %463, %493 : vector<16x32xf32>
    %495 = vector.broadcast %256 : vector<1x32xf32> to vector<16x32xf32>
    %496 = arith.addf %494, %495 : vector<16x32xf32>
    %c0_169 = arith.constant 0 : index
    %c0_170 = arith.constant 0 : index
    %497 = vector.load %arg4[%c0_169, %c0_170] : memref<16x32xf32, #tpu.memory_space<vmem>>, vector<16x32xf32>
    tpu.vector_store %arg4[%c0_169, %c0_170], %496 {strides = array<i32>} : memref<16x32xf32, #tpu.memory_space<vmem>>, vector<16x32xf32>,
    return
  }
  func.func @transform_0(%arg0: i32) -> (i32, i32) {
    %c0_i32 = arith.constant 0 : i32
    %c0_i32_0 = arith.constant 0 : i32
    return %arg0, %c0_i32 : i32, i32
  }
  func.func @transform_1(%arg0: i32) -> (i32, i32, i32) {
    %c0_i32 = arith.constant 0 : i32
    %c0_i32_0 = arith.constant 0 : i32
    %c0_i32_1 = arith.constant 0 : i32
    %c0_i32_2 = arith.constant 0 : i32
    return %c0_i32, %c0_i32_0, %c0_i32_1 : i32, i32, i32
  }
  func.func @transform_2(%arg0: i32) -> (i32, i32, i32) {
    %c0_i32 = arith.constant 0 : i32
    %c0_i32_0 = arith.constant 0 : i32
    %c0_i32_1 = arith.constant 0 : i32
    %c0_i32_2 = arith.constant 0 : i32
    return %c0_i32, %c0_i32_0, %c0_i32_1 : i32, i32, i32
  }
  func.func @transform_3(%arg0: i32) -> (i32, i32) {
    %c0_i32 = arith.constant 0 : i32
    %c0_i32_0 = arith.constant 0 : i32
    return %arg0, %c0_i32 : i32, i32
  }
}

</mosaic_0001>

<bundles_post_ra>
// kernel: tpu_custom_call.1
= control target key start
LH: loop header
LB: loop body
LE: loop exit
PB: predicated region body
PF: predicated region fallthrough
CT: control target
= control target key end

     0   :  { %8 = vsyncpa [#allocation4], 0  ;;  %s2679_s0 = inlined_call_operand.hbm [shape: f32[16,32], index: 0, kind: input, shape index: {}]   ;;  %s2680_s1 = inlined_call_operand.hbm [shape: bf16[2,160,128], index: 1, kind: input, shape index: {}]   ;;  %s2681_s2 = inlined_call_operand.hbm [shape: f32[2,8,128], index: 2, kind: input, shape index: {}]   ;;  %s2682_s3 = inlined_call_operand.hbm [shape: f32[16,32], index: 3, kind: output, shape index: {}]  }
   0x1   :  { %9 = vsyncpa [#allocation7], 0  ;;  %s28_s14 = sshll.u32 %s2680_s1, 4  ;;  %s29_s14 = int_to_ptr.hbm [resolvable:$true] %s28_s14 }
   0x2   :  { %10 = vsyncpa [#allocation5], 0  ;;  %s2168_s15 = smov [#allocation6]   ;;  %s15_s19 = sshll.u32 %s2679_s0, 4  ;;  %s16_s19 = int_to_ptr.hbm [resolvable:$true] %s15_s19 }
   0x3   :  { %s30_s16 = sshll.u32 %s2168_s15, 4  ;;  %s2169_s20 = smov 64   ;;  %s31_s16 = int_to_ptr.vmem [resolvable:$true] %s30_s16 }
   0x4   :  { %s2170_s21 = smov 4   ;;  %s2171_s22 = smov [#allocation3]  }
   0x5   :  { %36 = dma.hbm_to_vmem [thread:$0]  %s29_s14, 2560, %s31_s16, [#allocation7], %s2169_s20, %s2169_s20, %s2170_s21  }
   0x6   :  { %s17_s23 = sshll.u32 %s2171_s22, 4  ;;  %s2172_s24 = smov 128   ;;  %s18_s23 = int_to_ptr.vmem [resolvable:$true] %s17_s23 }
   0x7   :  { %s2173_s1 = smov 8   ;;  %s41_s27 = sshll.u32 %s2681_s2, 4  ;;  %s42_s27 = int_to_ptr.hbm [resolvable:$true] %s41_s27 }
   0x8   :  { %23 = dma.hbm_to_vmem [thread:$0]  %s16_s19, 256, %s18_s23, [#allocation4], %s2172_s24, %s2172_s24, %s2173_s1  }
   0x9   :  { %s2174_s0 = smov [#allocation8]  }
   0xa   :  { %s43_s28 = sshll.u32 %s2174_s0, 4  ;;  %s44_s28 = int_to_ptr.vmem [resolvable:$true] %s43_s28 }
   0xb   :  { %49 = dma.hbm_to_vmem [thread:$0]  %s42_s27, 256, %s44_s28, [#allocation7], %s2172_s24, %s2172_s24, %s2173_s1  }
   0xc   :  { %2162 = dma.done.wait [#allocation4], 256  }
   0xd   :  { %2163 = vsyncadd [#allocation4], 4294967040 }
   0xe   :  { %2164 = dma.done.wait [#allocation7], 2816  }
   0xf   :  { %2165 = vsyncadd [#allocation7], 4294964480  ;;  %vm86_vm0 = vcmask 261120   ;;  %v2226_v0 = vld [vmem:[#allocation3] sm:$0xff]  ;;  %v2230_v2 = vld [vmem:[#allocation3 + $0x8] sm:$0xff]  ;;  %v2175_v4 = vmov 32.0  }
  0x10   :  { %v87_v1 = vsel %vm86_vm0, %v2226_v0, 0.0  ;;  %v90_v3 = vsel %vm86_vm0, %v2230_v2, 0.0  ;;  %1984 = vrcp.f32 %v2175_v4  ;;  %v1944_v21 = vld [vmem:[#allocation6 + $0x8] sm:$0xff]  ;;  %v1943_v23 = vld [vmem:[#allocation6] sm:$0xff]  ;;  %s2176_s2 = smov 72   ;;  %s2177_s29 = smov 120  }
  0x11   :  { %88 = vadd.xlane.f32.xlu0 %v87_v1  ;;  %166 = vmatpush.bf16.msra.mxu0 %v1944_v21  ;;  %v2244_v40 = vld [vmem:[#allocation8] sm:$0xff]  ;;  %s2178_s30 = smov 96   ;;  %s2179_s4 = smov 112   ;;  %vm178_vm8 = vcmask 64512   ;;  %vm229_vm9 = vcmask 1043456  }
  0x12   :  { %v138_v43 = vperm.slane %v2244_v40, 0  ;;  %v141_v48 = vperm.slane %v2244_v40, 1  ;;  %s2180_s5 = smov 88   ;;  %s2181_s6 = smov 80  }
  0x13   :  { %s2182_s7 = smov 104   ;;  %s2183_s8 = smov 56  }
  0x14   :  { %s2184_s9 = smov 48   ;;  %s2185_s10 = smov 40  }
  0x15   :  { %167 = vmatpush.bf16.msra.mxu0 %v1943_v23  ;;  %s2186_s11 = smov 16   ;;  %s2187_s12 = smov 24  }
  0x16   :  { %v1985_v5 = vpop.eup %1984  ;;  %s2188_s13 = smov [#allocation9]   ;;  %s1809_s17 = sshll.u32 %s2682_s3, 4  ;;  %s1810_s17 = int_to_ptr.hbm [resolvable:$true] %s1809_s17 }
  0x17   :  { %v94_v6 = vmul.f32 32.0, %v1985_v5  ;;  %vm98_vm1 = vweird.f32 %v1985_v5  ;;  %s1807_s14 = sshll.u32 %s2188_s13, 4  ;;  %s1808_s14 = int_to_ptr.vmem [resolvable:$true] %s1807_s14 }
  0x19   :  { %91 = vadd.xlane.f32.xlu0 %v90_v3  ;;  %v95_v7 = vsub.f32 1.0, %v94_v6 }
  0x1b   :  { %v96_v8 = vmul.f32 %v1985_v5, %v95_v7 }
  0x1d   :  { %v97_v9 = vadd.f32 %v1985_v5, %v96_v8 }
  0x1f   :  { %v2234_v10 = vsel %vm98_vm1, %v1985_v5, %v97_v9 }
  0x84   :  { %v89_v11 = vpop.xlane.xlu0 %88 }
  0x85   :  { %v100_v12 = vmul.f32 %v2234_v10, %v89_v11 }
  0x87   :  { %v102_v13 = vsub.f32 %v2226_v0, %v100_v12 }
  0x89   :  { %v104_v14 = vmul.f32 %v102_v13, %v102_v13 }
  0x8b   :  { %v106_v15 = vsel %vm86_vm0, %v104_v14, 0.0 }
  0x8c   :  { %107 = vadd.xlane.f32.xlu1 %v106_v15  ;;  %v92_v16 = vpop.xlane.xlu0 %91 }
  0x8d   :  { %v101_v17 = vmul.f32 %v2234_v10, %v92_v16 }
  0x8f   :  { %v103_v18 = vsub.f32 %v2230_v2, %v101_v17 }
  0x91   :  { %v105_v19 = vmul.f32 %v103_v18, %v103_v18 }
  0x93   :  { %v109_v20 = vsel %vm86_vm0, %v105_v19, 0.0 }
  0x94   :  { %110 = vadd.xlane.f32.xlu1 %v109_v20 }
  0xff   :  { %v108_v22 = vpop.xlane.xlu1 %107 }
 0x100   :  { %v112_v24 = vmul.f32 %v108_v22, %v2234_v10 }
 0x102   :  { %v114_v25 = vadd.f32 1e-05, %v112_v24 }
 0x104   :  { %1986 = vrsqrt.f32 %v114_v25  ;;  %vm122_vm3 = vweird.f32 %v114_v25 }
 0x107   :  { %v111_v26 = vpop.xlane.xlu1 %110 }
 0x108   :  { %v113_v27 = vmul.f32 %v111_v26, %v2234_v10 }
 0x10a   :  { %v1987_v28 = vpop.eup %1986  ;;  %v115_v29 = vadd.f32 1e-05, %v113_v27 }
 0x10b   :  { %v117_v30 = vmul.f32 %v1987_v28, %v114_v25  ;;  %vm123_vm2 = vweird.f32 %v1987_v28 }
 0x10c   :  { %1988 = vrsqrt.f32 %v115_v29  ;;  %vm124_vm4 = vmor %vm122_vm3, %vm123_vm2  ;;  %vm132_vm6 = vweird.f32 %v115_v29 }
 0x10d   :  { %v118_v31 = vmul.f32 %v1987_v28, %v117_v30 }
 0x10f   :  { %v119_v32 = vmul.f32 0.5, %v118_v31 }
 0x111   :  { %v120_v33 = vsub.f32 1.5, %v119_v32 }
 0x112   :  { %v1989_v34 = vpop.eup %1988 }
 0x113   :  { %v121_v35 = vmul.f32 %v1987_v28, %v120_v33  ;;  %v127_v36 = vmul.f32 %v1989_v34, %v115_v29  ;;  %vm133_vm5 = vweird.f32 %v1989_v34 }
 0x114   :  { %vm134_vm7 = vmor %vm132_vm6, %vm133_vm5 }
 0x115   :  { %v128_v37 = vmul.f32 %v1989_v34, %v127_v36  ;;  %v125_v38 = vsel %vm124_vm4, %v1987_v28, %v121_v35 }
 0x116   :  { %v136_v42 = vmul.f32 %v125_v38, %v102_v13 }
 0x117   :  { %v129_v39 = vmul.f32 0.5, %v128_v37 }
 0x118   :  { %v139_v47 = vmul.f32 %v138_v43, %v136_v42 }
 0x119   :  { %v130_v41 = vsub.f32 1.5, %v129_v39 }
 0x11a   :  { %v142_v50 = vadd.f32 %v141_v48, %v139_v47 }
 0x11b   :  { %v131_v44 = vmul.f32 %v1989_v34, %v130_v41 }
 0x11d   :  { %v135_v45 = vsel %vm134_vm7, %v1989_v34, %v131_v44 }
 0x11e   :  { %v137_v46 = vmul.f32 %v135_v45, %v103_v18 }
 0x120   :  { %v140_v49 = vmul.f32 %v138_v43, %v137_v46 }
 0x122   :  { %v143_v51 = vadd.f32 %v141_v48, %v140_v49 }
 0x124   :  { %v144_v52 = vpack.c.bf16 %v143_v51, %v142_v50 }
 0x126   :  { %1831 = vmatmul.msk.bf16.vlgmr.msra.gmra.mxu0 %vm86_vm0, %v144_v52 }
 0x1a3   :  { %v169_v53 = vpop.f32.mrf.mxu0 }
 0x1a4   :  { %v2249_v54 = vpack.c.bf16 %v169_v53, %v169_v53 }
 0x1a6   :  { %401 = vrot.lane.b32.xlu1 %v2249_v54, %s2176_s2  ;;  %247 = vrot.lane.b32.xlu0 %v2249_v54, %s2177_s29 }
 0x1a7   :  { %176 = vrot.lane.b32.xlu2 %v2249_v54, %s2178_s30 }
 0x1ab   :  { %v171_v55 = vpop.f32.mrf.mxu0 }
 0x1ac   :  { %v2257_v56 = vpack.c.bf16 %v171_v55, %v171_v55 }
 0x1ae   :  { %323 = vrot.lane.b32.xlu0 %v2249_v54, %s2179_s4  ;;  %477 = vrot.lane.b32.xlu1 %v2257_v56, %s2178_s30 }
 0x1af   :  { %249 = vrot.lane.b32.xlu2 %v2249_v54, %s2180_s5 }
 0x1b6   :  { %698 = vrot.lane.b32.xlu0 %v2257_v56, %s2176_s2  ;;  %623 = vrot.lane.b32.xlu1 %v2257_v56, %s2181_s6 }
 0x1b7   :  { %399 = vrot.lane.b32.xlu2 %v2249_v54, %s2182_s7 }
 0x1be   :  { %621 = vrot.lane.b32.xlu0 %v2257_v56, %s2179_s4 }
 0x1bf   :  { %325 = vrot.lane.b32.xlu2 %v2249_v54, %s2181_s6 }
 0x1c7   :  { %548 = vrot.lane.b32.xlu2 %v2257_v56, %s2180_s5 }
 0x1cf   :  { %546 = vrot.lane.b32.xlu2 %v2257_v56, %s2177_s29 }
 0x1d7   :  { %696 = vrot.lane.b32.xlu2 %v2257_v56, %s2182_s7 }
 0x201   :  { %v177_v57 = vpop.permute.xlu2 %176 }
 0x202   :  { %v183_v58 = vsel %vm178_vm8, %v177_v57, 0 }
 0x203   :  { %192 = vmatpush.bf16.xpose.msra.mxu1 %v183_v58 }
 0x209   :  { %v250_v59 = vpop.permute.xlu2 %249 }
 0x20a   :  { %1832 = vmatmul.msk.bf16.vlgmr.msra.gmra.mxu1 %vm178_vm8, %v2249_v54  ;;  %v255_v60 = vsel %vm178_vm8, %v250_v59, 0 }
 0x20b   :  { %264 = vmatpush.bf16.xpose.msra.mxu3 %v255_v60 }
 0x211   :  { %v400_v61 = vpop.permute.xlu2 %399 }
 0x218   :  { %v402_v62 = vpop.permute.xlu1 %401  ;;  %v248_v63 = vpop.permute.xlu0 %247 }
 0x219   :  { %v326_v1 = vpop.permute.xlu2 %325  ;;  %1834 = vmatmul.msk.bf16.vlgmr.msra.gmra.mxu3 %vm178_vm8, %v248_v63  ;;  %v407_v3 = vsel %vm178_vm8, %v402_v62, 0 }
 0x21a   :  { %v331_v4 = vsel %vm178_vm8, %v326_v1, 0  ;;  %416 = vmatpush.bf16.xpose.msrb.mxu3 %v407_v3 }
 0x21b   :  { %340 = vmatpush.bf16.xpose.msrb.mxu0 %v331_v4 }
 0x220   :  { %v324_v5 = vpop.permute.xlu0 %323  ;;  %v478_v6 = vpop.permute.xlu1 %477 }
 0x221   :  { %v483_v7 = vsel %vm178_vm8, %v478_v6, 0  ;;  %v549_v8 = vpop.permute.xlu2 %548 }
 0x222   :  { %v554_v9 = vsel %vm178_vm8, %v549_v8, 0  ;;  %1836 = vmatmul.msk.bf16.vlgmr.msrb.gmra.mxu0 %vm178_vm8, %v324_v5 }
 0x223   :  { %492 = vmatpush.bf16.xpose.msra.mxu0 %v483_v7  ;;  %563 = vmatpush.bf16.xpose.msra.mxu3 %v554_v9 }
 0x228   :  { %v699_v11 = vpop.permute.xlu0 %698  ;;  %v624_v12 = vpop.permute.xlu1 %623 }
 0x229   :  { %v704_v13 = vsel %vm178_vm8, %v699_v11, 0  ;;  %v629_v14 = vsel %vm178_vm8, %v624_v12, 0  ;;  %1838 = vmatmul.msk.bf16.vlgmr.msrb.gmra.mxu3 %vm178_vm8, %v400_v61  ;;  %v547_v15 = vpop.permute.xlu2 %546 }
 0x22b   :  { %638 = vmatpush.bf16.xpose.msrb.mxu0 %v629_v14  ;;  %713 = vmatpush.bf16.xpose.msrb.mxu3 %v704_v13 }
 0x230   :  { %v622_v16 = vpop.permute.xlu0 %621 }
 0x231   :  { %v697_v17 = vpop.permute.xlu2 %696 }
 0x232   :  { %1840 = vmatmul.msk.bf16.vlgmr.msra.gmra.mxu0 %vm178_vm8, %v2257_v56 }
 0x239   :  { %1842 = vmatmul.msk.bf16.vlgmr.msra.gmra.mxu3 %vm178_vm8, %v547_v15 }
 0x242   :  { %1844 = vmatmul.msk.bf16.vlgmr.msrb.gmra.mxu0 %vm178_vm8, %v622_v16 }
 0x249   :  { %1846 = vmatmul.msk.bf16.vlgmr.msrb.gmra.mxu3 %vm178_vm8, %v697_v17 }
 0x287   :  { %v194_v18 = vpop.f32.mrf.mxu1 }
 0x288   :  { %v198_v19 = vmul.f32 0.35355338, %v194_v18 }
 0x28a   :  { %v199_v20 = vsel %vm178_vm8, %v198_v19, -inf }
 0x28b   :  { %200 = vmax.xlane.f32.xlu2 %v199_v20 }
 0x28f   :  { %v196_v21 = vpop.f32.mrf.mxu1 }
 0x29c   :  { %v266_v22 = vpop.f32.mrf.mxu3 }
 0x29d   :  { %v270_v23 = vmul.f32 0.35355338, %v266_v22 }
 0x29f   :  { %v342_v24 = vpop.f32.mrf.mxu0  ;;  %v271_v25 = vsel %vm178_vm8, %v270_v23, -inf }
 0x2a0   :  { %v346_v26 = vmul.f32 0.35355338, %v342_v24  ;;  %272 = vmax.xlane.f32.xlu1 %v271_v25 }
 0x2a2   :  { %v347_v27 = vsel %vm178_vm8, %v346_v26, -inf }
 0x2a3   :  { %348 = vmax.xlane.f32.xlu2 %v347_v27 }
 0x2a4   :  { %v268_v28 = vpop.f32.mrf.mxu3 }
 0x2a7   :  { %v344_v29 = vpop.f32.mrf.mxu0 }
 0x2ac   :  { %v418_v30 = vpop.f32.mrf.mxu3 }
 0x2ad   :  { %v2302_v31 = vmul.f32 0.35355338, %v418_v30 }
 0x2af   :  { %v494_v32 = vpop.f32.mrf.mxu0  ;;  %v423_v33 = vsel %vm178_vm8, %v2302_v31, -inf }
 0x2b0   :  { %424 = vmax.xlane.f32.xlu0 %v423_v33  ;;  %v498_v44 = vmul.f32 0.35355338, %v494_v32 }
 0x2b2   :  { %v499_v46 = vsel %vm178_vm8, %v498_v44, -inf }
 0x2b4   :  { %v420_v34 = vpop.f32.mrf.mxu3 }
 0x2b7   :  { %v496_v35 = vpop.f32.mrf.mxu0 }
 0x2b9   :  { %224 = vrot.lane.b32.xlu1 %v2249_v54, %s2169_s20 }
 0x2bb   :  { %296 = vrot.lane.b32.xlu2 %v2249_v54, %s2183_s8 }
 0x2bc   :  { %v565_v36 = vpop.f32.mrf.mxu3 }
 0x2bd   :  { %v2310_v43 = vmul.f32 0.35355338, %v565_v36 }
 0x2bf   :  { %v640_v37 = vpop.f32.mrf.mxu0  ;;  %v570_v45 = vsel %vm178_vm8, %v2310_v43, -inf }
 0x2c0   :  { %v644_v48 = vmul.f32 0.35355338, %v640_v37 }
 0x2c2   :  { %v645_v50 = vsel %vm178_vm8, %v644_v48, -inf }
 0x2c4   :  { %v567_v38 = vpop.f32.mrf.mxu3 }
 0x2c7   :  { %v642_v39 = vpop.f32.mrf.mxu0 }
 0x2cc   :  { %v715_v41 = vpop.f32.mrf.mxu3 }
 0x2cd   :  { %v719_v47 = vmul.f32 0.35355338, %v715_v41 }
 0x2cf   :  { %v720_v49 = vsel %vm178_vm8, %v719_v47, -inf }
 0x2d4   :  { %v717_v42 = vpop.f32.mrf.mxu3 }
 0x2e3   :  { %571 = vmax.xlane.f32.xlu1 %v570_v45 }
 0x2e4   :  { %500 = vmax.xlane.f32.xlu2 %v499_v46 }
 0x2eb   :  { %721 = vmax.xlane.f32.xlu1 %v720_v49 }
 0x2ec   :  { %646 = vmax.xlane.f32.xlu2 %v645_v50 }
 0x2fe   :  { %v201_v51 = vpop.xlane.xlu2 %200 }
 0x2ff   :  { %v202_v52 = vsub.f32 %v198_v19, %v201_v51 }
 0x301   :  { %v203_v53 = vmul.f32 1.442695, %v202_v52 }
 0x303   :  { %1990 = vpow2.f32 %v203_v53 }
 0x304   :  { %372 = vrot.lane.b32.xlu2 %v2249_v54, %s2184_s9  ;;  %448 = vrot.lane.b32.xlu1 %v2249_v54, %s2185_s10 }
 0x309   :  { %v2321_v55 = vpop.eup %1990 }
 0x30a   :  { %v205_v57 = vsel %vm178_vm8, %v2321_v55, 0.0 }
 0x30b   :  { %206 = vadd.xlane.f32.xlu0 %v205_v57 }
 0x313   :  { %v273_v58 = vpop.xlane.xlu1 %272 }
 0x314   :  { %v274_v61 = vsub.f32 %v270_v23, %v273_v58 }
 0x316   :  { %v349_v59 = vpop.xlane.xlu2 %348  ;;  %v275_v63 = vmul.f32 1.442695, %v274_v61 }
 0x317   :  { %v350_v60 = vsub.f32 %v346_v26, %v349_v59 }
 0x319   :  { %v351_v62 = vmul.f32 1.442695, %v350_v60 }
 0x31b   :  { %1992 = vpow2.f32 %v351_v62 }
 0x31c   :  { %1994 = vpow2.f32 %v275_v63 }
 0x31e   :  { %v297_v4 = vpop.permute.xlu2 %296 }
 0x31f   :  { %v302_v8 = vsel %vm229_vm9, %v297_v4, 0 }
 0x321   :  { %v2325_v1 = vpop.eup %1992 }
 0x322   :  { %v353_v3 = vsel %vm178_vm8, %v2325_v1, 0.0  ;;  %v2329_v54 = vpop.eup %1994 }
 0x323   :  { %354 = vadd.xlane.f32.xlu0 %v353_v3  ;;  %v277_v5 = vsel %vm178_vm8, %v2329_v54, 0.0  ;;  %v425_v11 = vpop.xlane.xlu0 %424 }
 0x324   :  { %v426_v14 = vsub.f32 %v2302_v31, %v425_v11 }
 0x326   :  { %v427_v16 = vmul.f32 1.442695, %v426_v14 }
 0x32b   :  { %278 = vadd.xlane.f32.xlu0 %v277_v5  ;;  %v225_v6 = vpop.permute.xlu1 %224 }
 0x32c   :  { %v231_v7 = vsel %vm229_vm9, %v225_v6, 0 }
 0x32d   :  { %240 = vmatpush.bf16.msra.mxu2 %v231_v7 }
 0x331   :  { %311 = vmatpush.bf16.msrb.mxu2 %v302_v8 }
 0x356   :  { %v572_v9 = vpop.xlane.xlu1 %571 }
 0x357   :  { %v501_v12 = vpop.xlane.xlu2 %500  ;;  %v573_v23 = vsub.f32 %v2310_v43, %v572_v9 }
 0x358   :  { %v502_v13 = vsub.f32 %v498_v44, %v501_v12 }
 0x359   :  { %v574_v26 = vmul.f32 1.442695, %v573_v23 }
 0x35a   :  { %v503_v15 = vmul.f32 1.442695, %v502_v13 }
 0x35c   :  { %1996 = vpow2.f32 %v503_v15 }
 0x35d   :  { %1998 = vpow2.f32 %v427_v16 }
 0x35e   :  { %v722_v17 = vpop.xlane.xlu1 %721 }
 0x35f   :  { %v723_v18 = vsub.f32 %v719_v47, %v722_v17  ;;  %v647_v19 = vpop.xlane.xlu2 %646 }
 0x360   :  { %v648_v20 = vsub.f32 %v644_v48, %v647_v19 }
 0x361   :  { %v724_v21 = vmul.f32 1.442695, %v723_v18 }
 0x362   :  { %v2336_v22 = vpop.eup %1996  ;;  %v649_v24 = vmul.f32 1.442695, %v648_v20 }
 0x363   :  { %2000 = vpow2.f32 %v724_v21  ;;  %v505_v25 = vsel %vm178_vm8, %v2336_v22, 0.0  ;;  %v2341_v28 = vpop.eup %1998 }
 0x364   :  { %2002 = vpow2.f32 %v649_v24  ;;  %506 = vadd.xlane.f32.xlu0 %v505_v25  ;;  %v429_v33 = vsel %vm178_vm8, %v2341_v28, 0.0 }
 0x365   :  { %2004 = vpow2.f32 %v574_v26 }
 0x367   :  { %v373_v27 = vpop.permute.xlu2 %372 }
 0x368   :  { %v378_v29 = vsel %vm229_vm9, %v373_v27, 0 }
 0x369   :  { %v2344_v30 = vpop.eup %2000  ;;  %387 = vmatpush.bf16.msrb.mxu1 %v378_v29 }
 0x36a   :  { %v2346_v31 = vpop.eup %2002  ;;  %v726_v32 = vsel %vm178_vm8, %v2344_v30, 0.0 }
 0x36b   :  { %727 = vadd.xlane.f32.xlu1 %v726_v32  ;;  %v651_v34 = vsel %vm178_vm8, %v2346_v31, 0.0  ;;  %v2354_v35 = vpop.eup %2004 }
 0x36c   :  { %430 = vadd.xlane.f32.xlu0 %v429_v33  ;;  %652 = vadd.xlane.f32.xlu2 %v651_v34  ;;  %v576_v36 = vsel %vm178_vm8, %v2354_v35, 0.0 }
 0x374   :  { %577 = vadd.xlane.f32.xlu0 %v576_v36 }
 0x376   :  { %v449_v50 = vpop.permute.xlu1 %448 }
 0x377   :  { %v454_v52 = vsel %vm229_vm9, %v449_v50, 0 }
 0x37e   :  { %v207_v37 = vpop.xlane.xlu0 %206 }
 0x37f   :  { %2006 = vrcp.f32 %v207_v37  ;;  %v219_v42 = vand.u32 2147483648, %v207_v37  ;;  %v217_v44 = vand.u32 2147483647, %v207_v37  ;;  %vm213_vm11 = vweird.f32 %v207_v37 }
 0x381   :  { %v220_v46 = vor.u32 1.1754944e-38, %v219_v42  ;;  %vm218_vm13 = vcmp.eq.f32.partialorder %v217_v44, 8.507059e+37 }
 0x385   :  { %v2007_v38 = vpop.eup %2006 }
 0x386   :  { %v209_v39 = vmul.f32 %v2007_v38, %v207_v37  ;;  %vm214_vm10 = vweird.f32 %v2007_v38 }
 0x387   :  { %vm215_vm12 = vmor %vm213_vm11, %vm214_vm10 }
 0x388   :  { %v210_v41 = vsub.f32 1.0, %v209_v39  ;;  %595 = vrot.lane.b32.xlu0 %v2257_v56, %s2183_s8 }
 0x38a   :  { %v211_v43 = vmul.f32 %v2007_v38, %v210_v41 }
 0x38c   :  { %v212_v45 = vadd.f32 %v2007_v38, %v211_v43 }
 0x38e   :  { %v216_v47 = vsel %vm215_vm12, %v2007_v38, %v212_v45 }
 0x38f   :  { %v221_v48 = vsel %vm218_vm13, %v220_v46, %v216_v47 }
 0x390   :  { %524 = vrot.lane.b32.xlu0 %v2257_v56, %s2169_s20  ;;  %v222_v49 = vmul.f32 %v2321_v55, %v221_v48 }
 0x392   :  { %v223_v51 = vpack.c.bf16 %v222_v49, %v222_v49 }
 0x394   :  { %1833 = vmatmul.msk.bf16.vlgmr.msra.gmra.mxu2 %vm178_vm8, %v223_v51 }
 0x395   :  { %463 = vmatpush.bf16.msra.mxu2 %v454_v52 }
 0x396   :  { %v355_v53 = vpop.xlane.xlu0 %354 }
 0x397   :  { %2008 = vrcp.f32 %v355_v53  ;;  %v367_v55 = vand.u32 2147483648, %v355_v53  ;;  %v365_v62 = vand.u32 2147483647, %v355_v53  ;;  %vm361_vm15 = vweird.f32 %v355_v53 }
 0x398   :  { %745 = vrot.lane.b32.xlu0 %v2257_v56, %s2185_s10 }
 0x399   :  { %v368_v4 = vor.u32 1.1754944e-38, %v367_v55  ;;  %vm366_vm2 = vcmp.eq.f32.partialorder %v365_v62, 8.507059e+37 }
 0x39d   :  { %v2009_v57 = vpop.eup %2008 }
 0x39e   :  { %v357_v58 = vmul.f32 %v2009_v57, %v355_v53  ;;  %v279_v59 = vpop.xlane.xlu0 %278  ;;  %vm362_vm14 = vweird.f32 %v2009_v57 }
 0x39f   :  { %2010 = vrcp.f32 %v279_v59  ;;  %vm363_vm1 = vmor %vm361_vm15, %vm362_vm14  ;;  %v291_v11 = vand.u32 2147483648, %v279_v59  ;;  %vm285_vm4 = vweird.f32 %v279_v59 }
 0x3a0   :  { %v358_v60 = vsub.f32 1.0, %v357_v58  ;;  %670 = vrot.lane.b32.xlu0 %v2257_v56, %s2184_s9  ;;  %v289_v56 = vand.u32 2147483647, %v279_v59 }
 0x3a1   :  { %v292_v15 = vor.u32 1.1754944e-38, %v291_v11 }
 0x3a2   :  { %v359_v61 = vmul.f32 %v2009_v57, %v358_v60  ;;  %vm290_vm6 = vcmp.eq.f32.partialorder %v289_v56, 8.507059e+37 }
 0x3a4   :  { %v360_v63 = vadd.f32 %v2009_v57, %v359_v61 }
 0x3a5   :  { %v2011_v3 = vpop.eup %2010 }
 0x3a6   :  { %v281_v5 = vmul.f32 %v2011_v3, %v279_v59  ;;  %v364_v6 = vsel %vm363_vm1, %v2009_v57, %v360_v63  ;;  %vm286_vm3 = vweird.f32 %v2011_v3 }
 0x3a7   :  { %v369_v7 = vsel %vm366_vm2, %v368_v4, %v364_v6  ;;  %vm287_vm5 = vmor %vm285_vm4, %vm286_vm3 }
 0x3a8   :  { %v282_v8 = vsub.f32 1.0, %v281_v5  ;;  %v370_v9 = vmul.f32 %v2325_v1, %v369_v7 }
 0x3aa   :  { %v283_v12 = vmul.f32 %v2011_v3, %v282_v8  ;;  %v371_v13 = vpack.c.bf16 %v370_v9, %v370_v9 }
 0x3ac   :  { %v284_v14 = vadd.f32 %v2011_v3, %v283_v12  ;;  %1837 = vmatmul.msk.bf16.vlgmr.msrb.gmra.mxu1 %vm178_vm8, %v371_v13 }
 0x3ae   :  { %v288_v16 = vsel %vm287_vm5, %v2011_v3, %v284_v14 }
 0x3af   :  { %v293_v17 = vsel %vm290_vm6, %v292_v15, %v288_v16 }
 0x3b0   :  { %v294_v18 = vmul.f32 %v2329_v54, %v293_v17 }
 0x3b2   :  { %v295_v19 = vpack.c.bf16 %v294_v18, %v294_v18 }
 0x3b4   :  { %1835 = vmatmul.msk.bf16.vlgmr.msrb.gmra.mxu2 %vm178_vm8, %v295_v19 }
 0x3d7   :  { %v507_v1 = vpop.xlane.xlu0 %506 }
 0x3d8   :  { %v519_v58 = vand.u32 2147483648, %v507_v1  ;;  %vm513_vm2 = vweird.f32 %v507_v1 }
 0x3da   :  { %v520_v4 = vor.u32 1.1754944e-38, %v519_v58  ;;  %v1946_v58 = vld [vmem:[#allocation6 + $0x18] sm:$0xff] }
 0x3db   :  { %795 = vmatpush.bf16.msra.mxu0 %v1946_v58  ;;  %v1949_v58 = vld [vmem:[#allocation6 + $0x30] sm:$0xff] }
 0x3de   :  { %v2373_v34 = vpop.xlane.xlu1 %727 }
 0x3df   :  { %v431_v20 = vpop.xlane.xlu0 %430  ;;  %v2375_v41 = vpop.xlane.xlu2 %652  ;;  %v740_v18 = vand.u32 2147483648, %v2373_v34 }
 0x3e0   :  { %2012 = vrcp.f32 %v431_v20  ;;  %v443_v27 = vand.u32 2147483648, %v431_v20  ;;  %v441_v33 = vand.u32 2147483647, %v431_v20  ;;  %vm437_vm10 = vweird.f32 %v431_v20 }
 0x3e1   :  { %2014 = vrcp.f32 %v507_v1 }
 0x3e2   :  { %v444_v36 = vor.u32 1.1754944e-38, %v443_v27  ;;  %vm442_vm12 = vcmp.eq.f32.partialorder %v441_v33, 8.507059e+37 }
 0x3e6   :  { %v2013_v21 = vpop.eup %2012 }
 0x3e7   :  { %v433_v23 = vmul.f32 %v2013_v21, %v431_v20  ;;  %v578_v24 = vpop.xlane.xlu0 %577  ;;  %v2015_v25 = vpop.eup %2014  ;;  %vm438_vm7 = vweird.f32 %v2013_v21  ;;  %v663_v20 = vand.u32 2147483647, %v2375_v41 }
 0x3e8   :  { %2016 = vrcp.f32 %v578_v24  ;;  %v509_v29 = vmul.f32 %v2015_v25, %v507_v1  ;;  %vm439_vm11 = vmor %vm437_vm10, %vm438_vm7  ;;  %v590_v51 = vand.u32 2147483648, %v578_v24  ;;  %vm514_vm14 = vweird.f32 %v2015_v25 }
 0x3e9   :  { %v434_v26 = vsub.f32 1.0, %v433_v23  ;;  %2018 = vrcp.f32 %v2373_v34  ;;  %vm584_vm15 = vweird.f32 %v578_v24  ;;  %v588_v53 = vand.u32 2147483647, %v578_v24  ;;  %vm515_vm3 = vmor %vm513_vm2, %vm514_vm14 }
 0x3ea   :  { %v510_v38 = vsub.f32 1.0, %v509_v29  ;;  %2020 = vrcp.f32 %v2375_v41  ;;  %v591_v55 = vor.u32 1.1754944e-38, %v590_v51  ;;  %vm734_vm7 = vweird.f32 %v2373_v34 }
 0x3eb   :  { %v435_v32 = vmul.f32 %v2013_v21, %v434_v26  ;;  %vm589_vm4 = vcmp.eq.f32.partialorder %v588_v53, 8.507059e+37  ;;  %vm397_vm2 = vcmask 195712  }
 0x3ec   :  { %v511_v46 = vmul.f32 %v2015_v25, %v510_v38 }
 0x3ed   :  { %v436_v54 = vadd.f32 %v2013_v21, %v435_v32 }
 0x3ee   :  { %v2017_v37 = vpop.eup %2016  ;;  %v512_v52 = vadd.f32 %v2015_v25, %v511_v46 }
 0x3ef   :  { %v440_v39 = vsel %vm439_vm11, %v2013_v21, %v436_v54  ;;  %v580_v43 = vmul.f32 %v2017_v37, %v578_v24  ;;  %vm585_vm13 = vweird.f32 %v2017_v37  ;;  %v2019_v49 = vpop.eup %2018  ;;  %v741_v21 = vor.u32 1.1754944e-38, %v740_v18 }
 0x3f0   :  { %v445_v42 = vsel %vm442_vm12, %v444_v36, %v440_v39  ;;  %v2021_v57 = vpop.eup %2020  ;;  %vm586_vm1 = vmor %vm584_vm15, %vm585_vm13  ;;  %v730_v59 = vmul.f32 %v2019_v49, %v2373_v34  ;;  %v516_v62 = vsel %vm515_vm3, %v2015_v25, %v512_v52  ;;  %vm735_vm6 = vweird.f32 %v2019_v49 }
 0x3f1   :  { %v446_v44 = vmul.f32 %v2341_v28, %v445_v42  ;;  %v581_v45 = vsub.f32 1.0, %v580_v43  ;;  %v517_v28 = vand.u32 2147483647, %v507_v1  ;;  %v655_v63 = vmul.f32 %v2021_v57, %v2375_v41  ;;  %vm736_vm11 = vmor %vm734_vm7, %vm735_vm6 }
 0x3f2   :  { %v731_v6 = vsub.f32 1.0, %v730_v59  ;;  %vm660_vm10 = vweird.f32 %v2021_v57  ;;  %vm659_vm12 = vweird.f32 %v2375_v41  ;;  %vm664_vm15 = vcmp.eq.f32.partialorder %v663_v20, 8.507059e+37  ;;  %v1948_v20 = vld [vmem:[#allocation6 + $0x28] sm:$0xff] }
 0x3f3   :  { %v447_v47 = vpack.c.bf16 %v446_v44, %v446_v44  ;;  %v582_v48 = vmul.f32 %v2017_v37, %v581_v45  ;;  %vm518_vm5 = vcmp.eq.f32.partialorder %v517_v28, 8.507059e+37  ;;  %v656_v8 = vsub.f32 1.0, %v655_v63  ;;  %vm661_vm13 = vmor %vm659_vm12, %vm660_vm10  ;;  %v1945_v28 = vld [vmem:[#allocation6 + $0x10] sm:$0xff] }
 0x3f4   :  { %v521_v7 = vsel %vm518_vm5, %v520_v4, %v516_v62  ;;  %v732_v12 = vmul.f32 %v2019_v49, %v731_v6  ;;  %796 = vmatpush.bf16.msra.mxu0 %v1945_v28  ;;  %vm473_vm3 = vcmask 261312   ;;  %v805_v4 = vperm.slane %v2244_v40, 2 }
 0x3f5   :  { %1839 = vmatmul.msk.bf16.vlgmr.msra.gmra.mxu2 %vm178_vm8, %v447_v47  ;;  %v583_v50 = vadd.f32 %v2017_v37, %v582_v48  ;;  %v522_v11 = vmul.f32 %v2336_v22, %v521_v7  ;;  %v657_v13 = vmul.f32 %v2021_v57, %v656_v8  ;;  %v665_v22 = vand.u32 2147483648, %v2375_v41 }
 0x3f6   :  { %v733_v16 = vadd.f32 %v2019_v49, %v732_v12  ;;  %vm916_vm12 = vcmask 523264  }
 0x3f7   :  { %v587_v60 = vsel %vm586_vm1, %v2017_v37, %v583_v50  ;;  %v523_v17 = vpack.c.bf16 %v522_v11, %v522_v11  ;;  %v658_v19 = vadd.f32 %v2021_v57, %v657_v13  ;;  %v666_v27 = vor.u32 1.1754944e-38, %v665_v22 }
 0x3f8   :  { %v592_v5 = vsel %vm589_vm4, %v591_v55, %v587_v60  ;;  %v737_v1 = vsel %vm736_vm11, %v2019_v49, %v733_v16  ;;  %vm321_vm1 = vcmask 130112  }
 0x3f9   :  { %v593_v9 = vmul.f32 %v2354_v35, %v592_v5  ;;  %v738_v35 = vand.u32 2147483647, %v2373_v34  ;;  %v662_v24 = vsel %vm661_vm13, %v2021_v57, %v658_v19 }
 0x3fa   :  { %v596_v61 = vpop.permute.xlu0 %595  ;;  %v667_v29 = vsel %vm664_vm15, %v666_v27, %v662_v24 }
 0x3fb   :  { %v601_v3 = vsel %vm229_vm9, %v596_v61, 0  ;;  %v594_v15 = vpack.c.bf16 %v593_v9, %v593_v9  ;;  %vm739_vm14 = vcmp.eq.f32.partialorder %v738_v35, 8.507059e+37  ;;  %v668_v33 = vmul.f32 %v2346_v31, %v667_v29 }
 0x3fc   :  { %610 = vmatpush.bf16.msrb.mxu2 %v601_v3  ;;  %v742_v26 = vsel %vm739_vm14, %v741_v21, %v737_v1 }
 0x3fd   :  { %v743_v32 = vmul.f32 %v2344_v30, %v742_v26  ;;  %v669_v37 = vpack.c.bf16 %v668_v33, %v668_v33 }
 0x3ff   :  { %v744_v36 = vpack.c.bf16 %v743_v32, %v743_v32 }
 0x402   :  { %v525_v56 = vpop.permute.xlu0 %524 }
 0x403   :  { %v530_v14 = vsel %vm229_vm9, %v525_v56, 0 }
 0x404   :  { %539 = vmatpush.bf16.msra.mxu1 %v530_v14 }
 0x405   :  { %1843 = vmatmul.msk.bf16.vlgmr.msrb.gmra.mxu2 %vm178_vm8, %v594_v15 }
 0x407   :  { %1841 = vmatmul.msk.bf16.vlgmr.msra.gmra.mxu1 %vm178_vm8, %v523_v17 }
 0x40a   :  { %v746_v23 = vpop.permute.xlu0 %745 }
 0x40b   :  { %v751_v25 = vsel %vm229_vm9, %v746_v23, 0  ;;  %v1947_v23 = vld [vmem:[#allocation6 + $0x20] sm:$0xff] }
 0x40c   :  { %760 = vmatpush.bf16.msra.mxu2 %v751_v25 }
 0x412   :  { %v671_v34 = vpop.permute.xlu0 %670 }
 0x413   :  { %v676_v54 = vsel %vm229_vm9, %v671_v34, 0 }
 0x414   :  { %685 = vmatpush.bf16.msrb.mxu1 %v676_v54 }
 0x415   :  { %1847 = vmatmul.msk.bf16.vlgmr.msra.gmra.mxu2 %vm178_vm8, %v744_v36 }
 0x417   :  { %v242_v38 = vpop.f32.mrf.mxu2  ;;  %1845 = vmatmul.msk.bf16.vlgmr.msrb.gmra.mxu1 %vm178_vm8, %v669_v37 }
 0x418   :  { %246 = vst.msk [vmem:[#allocation2] sm:$0xff] %vm178_vm8, %v242_v38  ;;  %881 = vmatpush.bf16.msra.mxu1 %v1948_v20 }
 0x41c   :  { %882 = vmatpush.bf16.msra.mxu1 %v1947_v23 }
 0x41f   :  { %v244_v39 = vpop.f32.mrf.mxu2 }
 0x429   :  { %v389_v41 = vpop.f32.mrf.mxu1 }
 0x42a   :  { %394 = vrot.lane.b32.xlu2 %v389_v41, %s2186_s11 }
 0x431   :  { %v391_v30 = vpop.f32.mrf.mxu1 }
 0x437   :  { %v313_v31 = vpop.f32.mrf.mxu2 }
 0x438   :  { %318 = vrot.lane.b32.xlu1 %v313_v31, %s2173_s1  ;;  %v852_v31 = vperm.slane %v2244_v40, 3 }
 0x43f   :  { %v315_v42 = vpop.f32.mrf.mxu2 }
 0x478   :  { %v465_v43 = vpop.f32.mrf.mxu2 }
 0x480   :  { %v467_v44 = vpop.f32.mrf.mxu2 }
 0x484   :  { %v541_v45 = vpop.f32.mrf.mxu1  ;;  %v395_v57 = vpop.permute.xlu2 %394 }
 0x485   :  { %545 = vst.msk [vmem:[#allocation2 + $0x8] sm:$0xff] %vm178_vm8, %v541_v45  ;;  %v855_v45 = vperm.slane %v2244_v40, 4 }
 0x488   :  { %v612_v46 = vpop.f32.mrf.mxu2 }
 0x48c   :  { %v543_v47 = vpop.f32.mrf.mxu1 }
 0x490   :  { %v614_v48 = vpop.f32.mrf.mxu2 }
 0x494   :  { %v687_v49 = vpop.f32.mrf.mxu1 }
 0x495   :  { %692 = vrot.lane.b32.xlu0 %v687_v49, %s2186_s11 }
 0x498   :  { %v762_v50 = vpop.f32.mrf.mxu2 }
 0x499   :  { %767 = vrot.lane.b32.xlu1 %v762_v50, %s2187_s12 }
 0x49c   :  { %v689_v51 = vpop.f32.mrf.mxu1 }
 0x49d   :  { %617 = vrot.lane.b32.xlu0 %v612_v46, %s2173_s1 }
 0x4a0   :  { %v764_v52 = vpop.f32.mrf.mxu2 }
 0x4a1   :  { %v1952_v52 = vld [vmem:[#allocation6 + $0x48] sm:$0xff] }
 0x4a2   :  { %924 = vmatpush.bf16.msra.mxu3 %v1952_v52 }
 0x4a5   :  { %470 = vrot.lane.b32.xlu0 %v465_v43, %s2187_s12 }
 0x4aa   :  { %v319_v53 = vpop.permute.xlu1 %318 }
 0x4ab   :  { %322 = vst.msk [vmem:[#allocation2] sm:$0xff] %vm321_vm1, %v319_v53  ;;  %v1951_v53 = vld [vmem:[#allocation6 + $0x40] sm:$0xff] }
 0x4ac   :  { %398 = vst.msk [vmem:[#allocation2] sm:$0xff] %vm397_vm2, %v395_v57  ;;  %925 = vmatpush.bf16.msra.mxu3 %v1951_v53  ;;  %v1950_v57 = vld [vmem:[#allocation6 + $0x38] sm:$0xff] }
 0x4b0   :  { %926 = vmatpush.bf16.msra.mxu3 %v1950_v57 }
 0x4b4   :  { %927 = vmatpush.bf16.msra.mxu3 %v1949_v58 }
 0x507   :  { %v693_v59 = vpop.permute.xlu0 %692 }
 0x50b   :  { %v768_v55 = vpop.permute.xlu1 %767 }
 0x50f   :  { %v618_v60 = vpop.permute.xlu0 %617 }
 0x510   :  { %620 = vst.msk [vmem:[#allocation2 + $0x8] sm:$0xff] %vm321_vm1, %v618_v60 }
 0x511   :  { %695 = vst.msk [vmem:[#allocation2 + $0x8] sm:$0xff] %vm397_vm2, %v693_v59  ;;  %v859_v59 = vperm.slane %v2244_v40, 6 }
 0x512   :  { %770 = vst.msk [vmem:[#allocation2 + $0x8] sm:$0xff] %vm473_vm3, %v768_v55 }
 0x517   :  { %v471_v61 = vpop.permute.xlu0 %470 }
 0x518   :  { %474 = vst.msk [vmem:[#allocation2] sm:$0xff] %vm473_vm3, %v471_v61 }
 0x519   :  { %v772_v63 = vld [vmem:[#allocation2 + $0x8] sm:$0xff] }
 0x51f   :  { %v771_v62 = vld [vmem:[#allocation2] sm:$0xff] }
 0x520   :  { %v773_v3 = vpack.c.bf16 %v772_v63, %v771_v62 }
 0x522   :  { %1856 = vmatmul.msk.bf16.vlgmr.msra.gmra.mxu0 %vm86_vm0, %v773_v3 }
 0x59f   :  { %v798_v5 = vpop.f32.mrf.mxu0 }
 0x5a0   :  { %v803_v6 = vadd.f32 %v798_v5, %v2226_v0 }
 0x5a2   :  { %v2418_v7 = vadd.f32 %v805_v4, %v803_v6 }
 0x5a4   :  { %v808_v8 = vsel %vm86_vm0, %v2418_v7, 0.0 }
 0x5a5   :  { %809 = vadd.xlane.f32.xlu0 %v808_v8 }
 0x5a7   :  { %v800_v9 = vpop.f32.mrf.mxu0 }
 0x5a8   :  { %v804_v11 = vadd.f32 %v800_v9, %v2230_v2 }
 0x5aa   :  { %v2423_v12 = vadd.f32 %v805_v4, %v804_v11  ;;  %v936_v4 = vperm.slane %v2244_v40, 5 }
 0x5ac   :  { %v811_v56 = vsel %vm86_vm0, %v2423_v12, 0.0 }
 0x5ad   :  { %812 = vadd.xlane.f32.xlu2 %v811_v56 }
 0x618   :  { %v810_v13 = vpop.xlane.xlu0 %809 }
 0x619   :  { %v814_v14 = vmul.f32 %v810_v13, %v2234_v10 }
 0x61b   :  { %v816_v0 = vsub.f32 %v2418_v7, %v814_v14 }
 0x61d   :  { %v818_v15 = vmul.f32 %v816_v0, %v816_v0 }
 0x61f   :  { %v820_v16 = vsel %vm86_vm0, %v818_v15, 0.0 }
 0x620   :  { %821 = vadd.xlane.f32.xlu1 %v820_v16  ;;  %v813_v17 = vpop.xlane.xlu2 %812 }
 0x621   :  { %v815_v18 = vmul.f32 %v813_v17, %v2234_v10 }
 0x623   :  { %v817_v2 = vsub.f32 %v2423_v12, %v815_v18 }
 0x625   :  { %v819_v35 = vmul.f32 %v817_v2, %v817_v2 }
 0x627   :  { %v823_v19 = vsel %vm86_vm0, %v819_v35, 0.0 }
 0x628   :  { %824 = vadd.xlane.f32.xlu2 %v823_v19 }
 0x693   :  { %v822_v22 = vpop.xlane.xlu1 %821 }
 0x694   :  { %v826_v1 = vmul.f32 %v822_v22, %v2234_v10 }
 0x696   :  { %v828_v21 = vadd.f32 1e-05, %v826_v1  ;;  %v1954_v1 = vld [vmem:[#allocation6 + $0x58] sm:$0xff] }
 0x697   :  { %1034 = vmatpush.bf16.msrb.mxu2 %v1954_v1 }
 0x698   :  { %2022 = vrsqrt.f32 %v828_v21  ;;  %vm836_vm5 = vweird.f32 %v828_v21 }
 0x69b   :  { %v825_v24 = vpop.xlane.xlu2 %824 }
 0x69c   :  { %v827_v25 = vmul.f32 %v825_v24, %v2234_v10 }
 0x69e   :  { %v2023_v26 = vpop.eup %2022  ;;  %v829_v27 = vadd.f32 1e-05, %v827_v25 }
 0x69f   :  { %v831_v29 = vmul.f32 %v2023_v26, %v828_v21  ;;  %vm837_vm4 = vweird.f32 %v2023_v26  ;;  %v1953_v21 = vld [vmem:[#allocation6 + $0x50] sm:$0xff] }
 0x6a0   :  { %2024 = vrsqrt.f32 %v829_v27  ;;  %vm838_vm6 = vmor %vm836_vm5, %vm837_vm4  ;;  %vm846_vm10 = vweird.f32 %v829_v27  ;;  %1035 = vmatpush.bf16.msrb.mxu2 %v1953_v21 }
 0x6a1   :  { %v832_v32 = vmul.f32 %v2023_v26, %v831_v29 }
 0x6a3   :  { %v833_v33 = vmul.f32 0.5, %v832_v32 }
 0x6a5   :  { %v834_v34 = vsub.f32 1.5, %v833_v33 }
 0x6a6   :  { %v2025_v54 = vpop.eup %2024 }
 0x6a7   :  { %v835_v36 = vmul.f32 %v2023_v26, %v834_v34  ;;  %v841_v37 = vmul.f32 %v2025_v54, %v829_v27  ;;  %vm847_vm7 = vweird.f32 %v2025_v54 }
 0x6a8   :  { %vm848_vm11 = vmor %vm846_vm10, %vm847_vm7 }
 0x6a9   :  { %v842_v38 = vmul.f32 %v2025_v54, %v841_v37  ;;  %v839_v39 = vsel %vm838_vm6, %v2023_v26, %v835_v36 }
 0x6aa   :  { %v850_v42 = vmul.f32 %v839_v39, %v816_v0 }
 0x6ab   :  { %v843_v41 = vmul.f32 0.5, %v842_v38  ;;  %v2459_v38 = vld [vmem:[#allocation8 + $0x8] sm:$0xff] }
 0x6ac   :  { %v853_v46 = vmul.f32 %v852_v31, %v850_v42 }
 0x6ad   :  { %v844_v30 = vsub.f32 1.5, %v843_v41 }
 0x6ae   :  { %v856_v49 = vadd.f32 %v855_v45, %v853_v46 }
 0x6af   :  { %v845_v43 = vmul.f32 %v2025_v54, %v844_v30 }
 0x6b1   :  { %v849_v44 = vsel %vm848_vm11, %v2025_v54, %v845_v43 }
 0x6b2   :  { %v851_v47 = vmul.f32 %v849_v44, %v817_v2 }
 0x6b4   :  { %v854_v48 = vmul.f32 %v852_v31, %v851_v47  ;;  %v1006_v31 = vperm.slane %v2459_v38, 0 }
 0x6b6   :  { %v857_v50 = vadd.f32 %v855_v45, %v854_v48  ;;  %v1009_v45 = vperm.slane %v2459_v38, 1 }
 0x6b8   :  { %v858_v51 = vpack.c.bf16 %v857_v50, %v856_v49 }
 0x6ba   :  { %1865 = vmatmul.msk.bf16.vlgmr.msra.gmra.mxu1 %vm86_vm0, %v858_v51 }
 0x737   :  { %v884_v28 = vpop.f32.mrf.mxu1 }
 0x738   :  { %v885_v60 = vadd.f32 %v884_v28, %v859_v59 }
 0x73a   :  { %v889_v62 = vmax.f32 %v885_v60, 0.0 }
 0x73f   :  { %v886_v55 = vpop.f32.mrf.mxu1 }
 0x740   :  { %v887_v61 = vadd.f32 %v886_v55, %v859_v59 }
 0x742   :  { %v890_v63 = vmax.f32 %v887_v61, 0.0 }
 0x744   :  { %v891_v3 = vpack.c.bf16 %v890_v63, %v889_v62 }
 0x746   :  { %1882 = vmatmul.msk.bf16.vlgmr.msra.gmra.mxu3 %vm916_vm12, %v891_v3 }
 0x7c9   :  { %v929_v5 = vpop.f32.mrf.mxu3 }
 0x7ca   :  { %v934_v6 = vadd.f32 %v929_v5, %v2418_v7 }
 0x7cc   :  { %v2442_v8 = vadd.f32 %v936_v4, %v934_v6 }
 0x7ce   :  { %v962_v9 = vsel %vm86_vm0, %v2442_v8, 0.0 }
 0x7cf   :  { %963 = vadd.xlane.f32.xlu0 %v962_v9 }
 0x7d1   :  { %v931_v11 = vpop.f32.mrf.mxu3 }
 0x7d2   :  { %v935_v56 = vadd.f32 %v931_v11, %v2423_v12 }
 0x7d4   :  { %v2447_v13 = vadd.f32 %v936_v4, %v935_v56 }
 0x7d6   :  { %v965_v14 = vsel %vm86_vm0, %v2447_v13, 0.0 }
 0x7d7   :  { %966 = vadd.xlane.f32.xlu1 %v965_v14 }
 0x842   :  { %v964_v0 = vpop.xlane.xlu0 %963 }
 0x843   :  { %v968_v40 = vmul.f32 %v964_v0, %v2234_v10 }
 0x845   :  { %v970_v7 = vsub.f32 %v2442_v8, %v968_v40 }
 0x847   :  { %v972_v15 = vmul.f32 %v970_v7, %v970_v7 }
 0x849   :  { %v974_v16 = vsel %vm86_vm0, %v972_v15, 0.0 }
 0x84a   :  { %975 = vadd.xlane.f32.xlu2 %v974_v16  ;;  %v967_v17 = vpop.xlane.xlu1 %966 }
 0x84b   :  { %v969_v18 = vmul.f32 %v967_v17, %v2234_v10 }
 0x84d   :  { %v971_v12 = vsub.f32 %v2447_v13, %v969_v18 }
 0x84f   :  { %v973_v2 = vmul.f32 %v971_v12, %v971_v12 }
 0x851   :  { %v977_v35 = vsel %vm86_vm0, %v973_v2, 0.0 }
 0x852   :  { %978 = vadd.xlane.f32.xlu0 %v977_v35 }
 0x8bd   :  { %v976_v19 = vpop.xlane.xlu2 %975 }
 0x8be   :  { %v980_v22 = vmul.f32 %v976_v19, %v2234_v10 }
 0x8c0   :  { %v982_v20 = vadd.f32 1e-05, %v980_v22 }
 0x8c2   :  { %2026 = vrsqrt.f32 %v982_v20  ;;  %vm990_vm14 = vweird.f32 %v982_v20 }
 0x8c5   :  { %v979_v23 = vpop.xlane.xlu0 %978 }
 0x8c6   :  { %v981_v24 = vmul.f32 %v979_v23, %v2234_v10 }
 0x8c8   :  { %v2027_v25 = vpop.eup %2026  ;;  %v983_v26 = vadd.f32 1e-05, %v981_v24 }
 0x8c9   :  { %v985_v27 = vmul.f32 %v2027_v25, %v982_v20  ;;  %vm991_vm13 = vweird.f32 %v2027_v25 }
 0x8ca   :  { %2028 = vrsqrt.f32 %v983_v26  ;;  %vm992_vm15 = vmor %vm990_vm14, %vm991_vm13  ;;  %vm1000_vm5 = vweird.f32 %v983_v26 }
 0x8cb   :  { %v986_v29 = vmul.f32 %v2027_v25, %v985_v27 }
 0x8cd   :  { %v987_v32 = vmul.f32 0.5, %v986_v29 }
 0x8cf   :  { %v988_v33 = vsub.f32 1.5, %v987_v32 }
 0x8d0   :  { %v2029_v34 = vpop.eup %2028 }
 0x8d1   :  { %v989_v54 = vmul.f32 %v2027_v25, %v988_v33  ;;  %v995_v36 = vmul.f32 %v2029_v34, %v983_v26  ;;  %vm1001_vm4 = vweird.f32 %v2029_v34 }
 0x8d2   :  { %vm1002_vm6 = vmor %vm1000_vm5, %vm1001_vm4 }
 0x8d3   :  { %v996_v37 = vmul.f32 %v2029_v34, %v995_v36  ;;  %v993_v39 = vsel %vm992_vm15, %v2027_v25, %v989_v54 }
 0x8d4   :  { %v1004_v42 = vmul.f32 %v993_v39, %v970_v7 }
 0x8d5   :  { %v997_v41 = vmul.f32 0.5, %v996_v37 }
 0x8d6   :  { %v1007_v46 = vmul.f32 %v1006_v31, %v1004_v42 }
 0x8d7   :  { %v998_v30 = vsub.f32 1.5, %v997_v41 }
 0x8d8   :  { %v1010_v49 = vadd.f32 %v1009_v45, %v1007_v46 }
 0x8d9   :  { %v999_v43 = vmul.f32 %v2029_v34, %v998_v30 }
 0x8db   :  { %v1003_v44 = vsel %vm1002_vm6, %v2029_v34, %v999_v43 }
 0x8dc   :  { %v1005_v47 = vmul.f32 %v1003_v44, %v971_v12 }
 0x8de   :  { %v1008_v48 = vmul.f32 %v1006_v31, %v1005_v47 }
 0x8e0   :  { %v1011_v50 = vadd.f32 %v1009_v45, %v1008_v48 }
 0x8e2   :  { %v1012_v51 = vpack.c.bf16 %v1011_v50, %v1010_v49 }
 0x8e4   :  { %1891 = vmatmul.msk.bf16.vlgmr.msrb.gmra.mxu2 %vm86_vm0, %v1012_v51 }
 0x967   :  { %v1037_v52 = vpop.f32.mrf.mxu2 }
 0x968   :  { %v2464_v53 = vpack.c.bf16 %v1037_v52, %v1037_v52 }
 0x96a   :  { %1044 = vrot.lane.b32.xlu0 %v2464_v53, %s2178_s30  ;;  %1113 = vrot.lane.b32.xlu2 %v2464_v53, %s2177_s29 }
 0x96b   :  { %1115 = vrot.lane.b32.xlu1 %v2464_v53, %s2180_s5 }
 0x96f   :  { %v1039_v57 = vpop.f32.mrf.mxu2 }
 0x970   :  { %v2478_v58 = vpack.c.bf16 %v1039_v57, %v1039_v57 }
 0x972   :  { %1265 = vrot.lane.b32.xlu0 %v2464_v53, %s2176_s2  ;;  %1190 = vrot.lane.b32.xlu2 %v2464_v53, %s2181_s6 }
 0x973   :  { %1263 = vrot.lane.b32.xlu1 %v2464_v53, %s2182_s7 }
 0x97a   :  { %1409 = vrot.lane.b32.xlu2 %v2478_v58, %s2177_s29  ;;  %1411 = vrot.lane.b32.xlu0 %v2478_v58, %s2180_s5 }
 0x97b   :  { %1188 = vrot.lane.b32.xlu1 %v2464_v53, %s2179_s4 }
 0x982   :  { %1559 = vrot.lane.b32.xlu2 %v2478_v58, %s2182_s7  ;;  %1340 = vrot.lane.b32.xlu0 %v2478_v58, %s2178_s30 }
 0x983   :  { %1561 = vrot.lane.b32.xlu1 %v2478_v58, %s2176_s2 }
 0x98a   :  { %1486 = vrot.lane.b32.xlu0 %v2478_v58, %s2181_s6 }
 0x98b   :  { %1484 = vrot.lane.b32.xlu1 %v2478_v58, %s2179_s4 }
 0x9c4   :  { %v1114_v28 = vpop.permute.xlu2 %1113 }
 0x9cc   :  { %v1191_v59 = vpop.permute.xlu2 %1190 }
 0x9cd   :  { %v1196_v62 = vsel %vm178_vm8, %v1191_v59, 0 }
 0x9d4   :  { %v1410_v16 = vpop.permute.xlu2 %1409 }
 0x9dc   :  { %v1045_v60 = vpop.permute.xlu0 %1044  ;;  %v1560_v18 = vpop.permute.xlu2 %1559 }
 0x9dd   :  { %v1050_v55 = vsel %vm178_vm8, %v1045_v60, 0  ;;  %v1116_v61 = vpop.permute.xlu1 %1115 }
 0x9de   :  { %v1121_v63 = vsel %vm178_vm8, %v1116_v61, 0  ;;  %1059 = vmatpush.bf16.xpose.msrb.mxu0 %v1050_v55 }
 0x9df   :  { %1130 = vmatpush.bf16.xpose.msrb.mxu3 %v1121_v63 }
 0x9e4   :  { %v1266_v3 = vpop.permute.xlu0 %1265 }
 0x9e5   :  { %v1271_v4 = vsel %vm178_vm8, %v1266_v3, 0  ;;  %v1264_v5 = vpop.permute.xlu1 %1263  ;;  %1892 = vmatmul.msk.bf16.vlgmr.msrb.gmra.mxu0 %vm178_vm8, %v2464_v53 }
 0x9e6   :  { %1205 = vmatpush.bf16.xpose.msra.mxu0 %v1196_v62  ;;  %1894 = vmatmul.msk.bf16.vlgmr.msrb.gmra.mxu3 %vm178_vm8, %v1114_v28 }
 0x9e7   :  { %1280 = vmatpush.bf16.xpose.msra.mxu3 %v1271_v4 }
 0x9ec   :  { %v1412_v6 = vpop.permute.xlu0 %1411 }
 0x9ed   :  { %v1189_v9 = vpop.permute.xlu1 %1188  ;;  %v1417_v11 = vsel %vm178_vm8, %v1412_v6, 0 }
 0x9ef   :  { %1426 = vmatpush.bf16.xpose.msrb.mxu3 %v1417_v11 }
 0x9f4   :  { %v1341_v56 = vpop.permute.xlu0 %1340 }
 0x9f5   :  { %v1562_v14 = vpop.permute.xlu1 %1561  ;;  %v1346_v0 = vsel %vm178_vm8, %v1341_v56, 0  ;;  %1896 = vmatmul.msk.bf16.vlgmr.msra.gmra.mxu0 %vm178_vm8, %v1189_v9 }
 0x9f6   :  { %v1567_v40 = vsel %vm178_vm8, %v1562_v14, 0  ;;  %1898 = vmatmul.msk.bf16.vlgmr.msra.gmra.mxu3 %vm178_vm8, %v1264_v5  ;;  %1355 = vmatpush.bf16.xpose.msrb.mxu0 %v1346_v0 }
 0x9f7   :  { %1576 = vmatpush.bf16.xpose.msra.mxu3 %v1567_v40 }
 0x9fc   :  { %v1487_v7 = vpop.permute.xlu0 %1486 }
 0x9fd   :  { %v1492_v15 = vsel %vm178_vm8, %v1487_v7, 0  ;;  %v1485_v17 = vpop.permute.xlu1 %1484 }
 0x9fe   :  { %1501 = vmatpush.bf16.xpose.msra.mxu0 %v1492_v15 }
 0xa05   :  { %1900 = vmatmul.msk.bf16.vlgmr.msrb.gmra.mxu0 %vm178_vm8, %v2478_v58 }
 0xa06   :  { %1902 = vmatmul.msk.bf16.vlgmr.msrb.gmra.mxu3 %vm178_vm8, %v1410_v16 }
 0xa15   :  { %1904 = vmatmul.msk.bf16.vlgmr.msra.gmra.mxu0 %vm178_vm8, %v1485_v17 }
 0xa16   :  { %1906 = vmatmul.msk.bf16.vlgmr.msra.gmra.mxu3 %vm178_vm8, %v1560_v18 }
 0xa62   :  { %v1061_v12 = vpop.f32.mrf.mxu0 }
 0xa63   :  { %v1065_v2 = vmul.f32 0.35355338, %v1061_v12 }
 0xa65   :  { %v1066_v35 = vsel %vm178_vm8, %v1065_v2, -inf }
 0xa66   :  { %1067 = vmax.xlane.f32.xlu0 %v1066_v35 }
 0xa69   :  { %v1132_v19 = vpop.f32.mrf.mxu3 }
 0xa6a   :  { %v1136_v22 = vmul.f32 0.35355338, %v1132_v19  ;;  %v1063_v1 = vpop.f32.mrf.mxu0 }
 0xa6c   :  { %v1137_v20 = vsel %vm178_vm8, %v1136_v22, -inf }
 0xa6d   :  { %1138 = vmax.xlane.f32.xlu2 %v1137_v20 }
 0xa71   :  { %v1134_v21 = vpop.f32.mrf.mxu3 }
 0xa72   :  { %v1207_v23 = vpop.f32.mrf.mxu0 }
 0xa73   :  { %v1211_v24 = vmul.f32 0.35355338, %v1207_v23 }
 0xa75   :  { %v1212_v25 = vsel %vm178_vm8, %v1211_v24, -inf }
 0xa76   :  { %1213 = vmax.xlane.f32.xlu2 %v1212_v25 }
 0xa79   :  { %v1282_v26 = vpop.f32.mrf.mxu3 }
 0xa7a   :  { %v1286_v27 = vmul.f32 0.35355338, %v1282_v26  ;;  %v1209_v29 = vpop.f32.mrf.mxu0 }
 0xa7c   :  { %v1287_v32 = vsel %vm178_vm8, %v1286_v27, -inf }
 0xa7d   :  { %1288 = vmax.xlane.f32.xlu1 %v1287_v32 }
 0xa81   :  { %v1284_v33 = vpop.f32.mrf.mxu3 }
 0xa82   :  { %v1357_v34 = vpop.f32.mrf.mxu0 }
 0xa83   :  { %v1361_v54 = vmul.f32 0.35355338, %v1357_v34 }
 0xa85   :  { %v1362_v36 = vsel %vm178_vm8, %v1361_v54, -inf }
 0xa86   :  { %1363 = vmax.xlane.f32.xlu1 %v1362_v36 }
 0xa89   :  { %v1428_v37 = vpop.f32.mrf.mxu3 }
 0xa8a   :  { %v1432_v39 = vmul.f32 0.35355338, %v1428_v37  ;;  %v1359_v41 = vpop.f32.mrf.mxu0 }
 0xa8c   :  { %v1433_v30 = vsel %vm178_vm8, %v1432_v39, -inf }
 0xa8d   :  { %1434 = vmax.xlane.f32.xlu0 %v1433_v30 }
 0xa8e   :  { %1312 = vrot.lane.b32.xlu2 %v2464_v53, %s2185_s10 }
 0xa91   :  { %v1430_v31 = vpop.f32.mrf.mxu3 }
 0xa92   :  { %v1503_v42 = vpop.f32.mrf.mxu0 }
 0xa93   :  { %v1507_v43 = vmul.f32 0.35355338, %v1503_v42 }
 0xa95   :  { %v1508_v44 = vsel %vm178_vm8, %v1507_v43, -inf }
 0xa96   :  { %1509 = vmax.xlane.f32.xlu1 %v1508_v44 }
 0xa99   :  { %v1578_v45 = vpop.f32.mrf.mxu3 }
 0xa9a   :  { %v1505_v46 = vpop.f32.mrf.mxu0  ;;  %v1582_v48 = vmul.f32 0.35355338, %v1578_v45 }
 0xa9c   :  { %v1583_v49 = vsel %vm178_vm8, %v1582_v48, -inf }
 0xaa1   :  { %1091 = vrot.lane.b32.xlu0 %v2464_v53, %s2169_s20  ;;  %v1580_v47 = vpop.f32.mrf.mxu3 }
 0xaaf   :  { %1162 = vrot.lane.b32.xlu1 %v2464_v53, %s2183_s8 }
 0xab7   :  { %1584 = vmax.xlane.f32.xlu2 %v1583_v49 }
 0xad9   :  { %v1068_v50 = vpop.xlane.xlu0 %1067 }
 0xada   :  { %v1069_v51 = vsub.f32 %v1065_v2, %v1068_v50 }
 0xadc   :  { %v1070_v52 = vmul.f32 1.442695, %v1069_v51 }
 0xade   :  { %2030 = vpow2.f32 %v1070_v52 }
 0xae0   :  { %v1139_v57 = vpop.xlane.xlu2 %1138 }
 0xae1   :  { %v1140_v28 = vsub.f32 %v1136_v22, %v1139_v57 }
 0xae3   :  { %v1141_v59 = vmul.f32 1.442695, %v1140_v28 }
 0xae4   :  { %v2528_v60 = vpop.eup %2030 }
 0xae5   :  { %2032 = vpow2.f32 %v1141_v59  ;;  %v1072_v55 = vsel %vm178_vm8, %v2528_v60, 0.0 }
 0xae6   :  { %1073 = vadd.xlane.f32.xlu2 %v1072_v55 }
 0xae9   :  { %v1214_v56 = vpop.xlane.xlu2 %1213 }
 0xaea   :  { %v1215_v40 = vsub.f32 %v1211_v24, %v1214_v56 }
 0xaeb   :  { %v2532_v61 = vpop.eup %2032 }
 0xaec   :  { %v1143_v62 = vsel %vm178_vm8, %v2532_v61, 0.0  ;;  %v1216_v7 = vmul.f32 1.442695, %v1215_v40 }
 0xaed   :  { %1144 = vadd.xlane.f32.xlu0 %v1143_v62 }
 0xaf0   :  { %v1289_v63 = vpop.xlane.xlu1 %1288 }
 0xaf1   :  { %v1290_v15 = vsub.f32 %v1286_v27, %v1289_v63 }
 0xaf3   :  { %v1291_v17 = vmul.f32 1.442695, %v1290_v15 }
 0xaf9   :  { %v1364_v3 = vpop.xlane.xlu1 %1363 }
 0xafa   :  { %v1365_v4 = vsub.f32 %v1361_v54, %v1364_v3 }
 0xafc   :  { %v1366_v5 = vmul.f32 1.442695, %v1365_v4 }
 0xafe   :  { %2034 = vpow2.f32 %v1366_v5  ;;  %1458 = vrot.lane.b32.xlu2 %v2478_v58, %s2183_s8 }
 0xaff   :  { %2036 = vpow2.f32 %v1216_v7 }
 0xb00   :  { %v1435_v11 = vpop.xlane.xlu0 %1434  ;;  %2038 = vpow2.f32 %v1291_v17 }
 0xb01   :  { %1237 = vrot.lane.b32.xlu0 %v2464_v53, %s2184_s9  ;;  %v1436_v18 = vsub.f32 %v1432_v39, %v1435_v11  ;;  %v1313_v53 = vpop.permute.xlu2 %1312 }
 0xb02   :  { %v1318_v22 = vsel %vm229_vm9, %v1313_v53, 0 }
 0xb03   :  { %v1437_v12 = vmul.f32 1.442695, %v1436_v18 }
 0xb04   :  { %v2540_v6 = vpop.eup %2034 }
 0xb05   :  { %v1368_v9 = vsel %vm178_vm8, %v2540_v6, 0.0  ;;  %v2548_v19 = vpop.eup %2036  ;;  %2040 = vpow2.f32 %v1437_v12 }
 0xb06   :  { %1369 = vadd.xlane.f32.xlu1 %v1368_v9  ;;  %v1218_v20 = vsel %vm178_vm8, %v2548_v19, 0.0  ;;  %v2553_v21 = vpop.eup %2038 }
 0xb07   :  { %v1293_v24 = vsel %vm178_vm8, %v2553_v21, 0.0 }
 0xb09   :  { %v1510_v16 = vpop.xlane.xlu1 %1509 }
 0xb0a   :  { %v1511_v1 = vsub.f32 %v1507_v43, %v1510_v16 }
 0xb0b   :  { %v2557_v26 = vpop.eup %2040 }
 0xb0c   :  { %v1512_v23 = vmul.f32 1.442695, %v1511_v1  ;;  %v1439_v32 = vsel %vm178_vm8, %v2557_v26, 0.0 }
 0xb0e   :  { %2042 = vpow2.f32 %v1512_v23 }
 0xb13   :  { %v1092_v14 = vpop.permute.xlu0 %1091 }
 0xb14   :  { %v1097_v0 = vsel %vm229_vm9, %v1092_v14, 0  ;;  %v2561_v33 = vpop.eup %2042 }
 0xb15   :  { %1106 = vmatpush.bf16.msrb.mxu1 %v1097_v0  ;;  %v1514_v36 = vsel %vm178_vm8, %v2561_v33, 0.0 }
 0xb1f   :  { %1387 = vrot.lane.b32.xlu1 %v2478_v58, %s2169_s20 }
 0xb21   :  { %v1163_v2 = vpop.permute.xlu1 %1162 }
 0xb22   :  { %v1168_v35 = vsel %vm229_vm9, %v1163_v2, 0 }
 0xb23   :  { %1177 = vmatpush.bf16.msra.mxu2 %v1168_v35 }
 0xb27   :  { %1327 = vmatpush.bf16.msrb.mxu2 %v1318_v22  ;;  %1219 = vadd.xlane.f32.xlu2 %v1218_v20 }
 0xb2a   :  { %v1585_v25 = vpop.xlane.xlu2 %1584 }
 0xb2b   :  { %1294 = vadd.xlane.f32.xlu0 %v1293_v24  ;;  %v1586_v27 = vsub.f32 %v1582_v48, %v1585_v25 }
 0xb2d   :  { %v1587_v29 = vmul.f32 1.442695, %v1586_v27 }
 0xb2f   :  { %2044 = vpow2.f32 %v1587_v29  ;;  %1440 = vadd.xlane.f32.xlu2 %v1439_v32 }
 0xb35   :  { %v2563_v34 = vpop.eup %2044 }
 0xb36   :  { %v1589_v54 = vsel %vm178_vm8, %v2563_v34, 0.0 }
 0xb37   :  { %1590 = vadd.xlane.f32.xlu0 %v1589_v54  ;;  %1515 = vadd.xlane.f32.xlu2 %v1514_v36 }
 0xb4b   :  { %1608 = vrot.lane.b32.xlu0 %v2478_v58, %s2185_s10 }
 0xb4f   :  { %1533 = vrot.lane.b32.xlu2 %v2478_v58, %s2184_s9 }
 0xb59   :  { %v1074_v37 = vpop.xlane.xlu2 %1073 }
 0xb5a   :  { %2046 = vrcp.f32 %v1074_v37  ;;  %v1086_v42 = vand.u32 2147483648, %v1074_v37  ;;  %v1084_v44 = vand.u32 2147483647, %v1074_v37  ;;  %vm1080_vm10 = vweird.f32 %v1074_v37 }
 0xb5c   :  { %v1087_v47 = vor.u32 1.1754944e-38, %v1086_v42  ;;  %vm1085_vm13 = vcmp.eq.f32.partialorder %v1084_v44, 8.507059e+37 }
 0xb60   :  { %v2047_v39 = vpop.eup %2046  ;;  %v1145_v41 = vpop.xlane.xlu0 %1144 }
 0xb61   :  { %v1076_v30 = vmul.f32 %v2047_v39, %v1074_v37  ;;  %2048 = vrcp.f32 %v1145_v41  ;;  %vm1081_vm7 = vweird.f32 %v2047_v39  ;;  %v1157_v52 = vand.u32 2147483648, %v1145_v41  ;;  %v1459_v5 = vpop.permute.xlu2 %1458 }
 0xb62   :  { %vm1082_vm11 = vmor %vm1080_vm10, %vm1081_vm7  ;;  %v1155_v28 = vand.u32 2147483647, %v1145_v41  ;;  %vm1151_vm15 = vweird.f32 %v1145_v41  ;;  %v1464_v56 = vsel %vm229_vm9, %v1459_v5, 0 }
 0xb63   :  { %v1077_v31 = vsub.f32 1.0, %v1076_v30  ;;  %v1158_v62 = vor.u32 1.1754944e-38, %v1157_v52 }
 0xb64   :  { %vm1156_vm5 = vcmp.eq.f32.partialorder %v1155_v28, 8.507059e+37 }
 0xb65   :  { %v1078_v43 = vmul.f32 %v2047_v39, %v1077_v31 }
 0xb67   :  { %v2049_v45 = vpop.eup %2048  ;;  %v1079_v46 = vadd.f32 %v2047_v39, %v1078_v43 }
 0xb68   :  { %v1147_v48 = vmul.f32 %v2049_v45, %v1145_v41  ;;  %vm1152_vm14 = vweird.f32 %v2049_v45 }
 0xb69   :  { %v1083_v49 = vsel %vm1082_vm11, %v2047_v39, %v1079_v46  ;;  %vm1153_vm4 = vmor %vm1151_vm15, %vm1152_vm14 }
 0xb6a   :  { %v1088_v58 = vsel %vm1085_vm13, %v1087_v47, %v1083_v49  ;;  %v1148_v50 = vsub.f32 1.0, %v1147_v48 }
 0xb6b   :  { %v1089_v51 = vmul.f32 %v2528_v60, %v1088_v58 }
 0xb6c   :  { %v1149_v57 = vmul.f32 %v2049_v45, %v1148_v50 }
 0xb6d   :  { %v1090_v59 = vpack.c.bf16 %v1089_v51, %v1089_v51 }
 0xb6e   :  { %v1150_v55 = vadd.f32 %v2049_v45, %v1149_v57 }
 0xb6f   :  { %1893 = vmatmul.msk.bf16.vlgmr.msrb.gmra.mxu1 %vm178_vm8, %v1090_v59 }
 0xb70   :  { %v1154_v63 = vsel %vm1153_vm4, %v2049_v45, %v1150_v55 }
 0xb71   :  { %v1159_v3 = vsel %vm1156_vm5, %v1158_v62, %v1154_v63 }
 0xb72   :  { %v1160_v4 = vmul.f32 %v2532_v61, %v1159_v3 }
 0xb73   :  { %v1238_v9 = vpop.permute.xlu0 %1237 }
 0xb74   :  { %v1243_v60 = vsel %vm229_vm9, %v1238_v9, 0  ;;  %v1161_v11 = vpack.c.bf16 %v1160_v4, %v1160_v4 }
 0xb75   :  { %1252 = vmatpush.bf16.msra.mxu1 %v1243_v60 }
 0xb76   :  { %1895 = vmatmul.msk.bf16.vlgmr.msra.gmra.mxu2 %vm178_vm8, %v1161_v11 }
 0xb77   :  { %1473 = vmatpush.bf16.msra.mxu2 %v1464_v56 }
 0xb79   :  { %v2579_v14 = vpop.xlane.xlu1 %1369 }
 0xb7a   :  { %2050 = vrcp.f32 %v2579_v14  ;;  %v1382_v52 = vand.u32 2147483648, %v2579_v14  ;;  %v1380_v59 = vand.u32 2147483647, %v2579_v14 }
 0xb7c   :  { %v1383_v5 = vor.u32 1.1754944e-38, %v1382_v52 }
 0xb80   :  { %v2583_v15 = vpop.eup %2050 }
 0xb81   :  { %v1372_v53 = vmul.f32 %v2583_v15, %v2579_v14  ;;  %vm1377_vm5 = vweird.f32 %v2583_v15 }
 0xb83   :  { %v1373_v23 = vsub.f32 1.0, %v1372_v53 }
 0xb85   :  { %v1374_v45 = vmul.f32 %v2583_v15, %v1373_v23 }
 0xb91   :  { %v1388_v0 = vpop.permute.xlu1 %1387 }
 0xb92   :  { %v1393_v40 = vsel %vm229_vm9, %v1388_v0, 0 }
 0xb93   :  { %1402 = vmatpush.bf16.msrb.mxu1 %v1393_v40 }
 0xb9a   :  { %v1220_v61 = vpop.xlane.xlu2 %1219 }
 0xb9b   :  { %2052 = vrcp.f32 %v1220_v61  ;;  %v1230_v35 = vand.u32 2147483647, %v1220_v61  ;;  %v1232_v22 = vand.u32 2147483648, %v1220_v61  ;;  %vm1226_vm7 = vweird.f32 %v1220_v61 }
 0xb9d   :  { %vm1231_vm11 = vcmp.eq.f32.partialorder %v1230_v35, 8.507059e+37  ;;  %v1233_v29 = vor.u32 1.1754944e-38, %v1232_v22 }
 0xb9e   :  { %v1295_v7 = vpop.xlane.xlu0 %1294 }
 0xb9f   :  { %2054 = vrcp.f32 %v1295_v7  ;;  %v1305_v32 = vand.u32 2147483647, %v1295_v7  ;;  %v1307_v54 = vand.u32 2147483648, %v1295_v7  ;;  %vm1301_vm14 = vweird.f32 %v1295_v7 }
 0xba1   :  { %v2053_v16 = vpop.eup %2052  ;;  %v1308_v46 = vor.u32 1.1754944e-38, %v1307_v54  ;;  %vm1306_vm4 = vcmp.eq.f32.partialorder %v1305_v32, 8.507059e+37 }
 0xba2   :  { %v1222_v17 = vmul.f32 %v2053_v16, %v1220_v61  ;;  %v2585_v18 = vpop.xlane.xlu2 %1440  ;;  %vm1227_vm6 = vweird.f32 %v2053_v16 }
 0xba3   :  { %2056 = vrcp.f32 %v2585_v18  ;;  %vm1228_vm10 = vmor %vm1226_vm7, %vm1227_vm6  ;;  %vm1376_vm6 = vweird.f32 %v2579_v14  ;;  %v1453_v3 = vand.u32 2147483648, %v2585_v18  ;;  %v1451_v9 = vand.u32 2147483647, %v2585_v18 }
 0xba4   :  { %v1223_v12 = vsub.f32 1.0, %v1222_v17  ;;  %vm1378_vm7 = vmor %vm1376_vm6, %vm1377_vm5 }
 0xba5   :  { %v2055_v2 = vpop.eup %2054  ;;  %v1454_v14 = vor.u32 1.1754944e-38, %v1453_v3 }
 0xba6   :  { %v1224_v1 = vmul.f32 %v2053_v16, %v1223_v12  ;;  %v1297_v20 = vmul.f32 %v2055_v2, %v1295_v7  ;;  %vm1302_vm13 = vweird.f32 %v2055_v2 }
 0xba7   :  { %vm1303_vm15 = vmor %vm1301_vm14, %vm1302_vm13  ;;  %vm1381_vm13 = vcmp.eq.f32.partialorder %v1380_v59, 8.507059e+37  ;;  %v1955_v59 = vld [vmem:[#allocation6 + $0x60] sm:$0xff] }
 0xba8   :  { %v1225_v24 = vadd.f32 %v2053_v16, %v1224_v1  ;;  %v1298_v25 = vsub.f32 1.0, %v1297_v20 }
 0xba9   :  { %v2057_v27 = vpop.eup %2056 }
 0xbaa   :  { %v1229_v36 = vsel %vm1228_vm10, %v2053_v16, %v1225_v24  ;;  %v1299_v37 = vmul.f32 %v2055_v2, %v1298_v25  ;;  %v1443_v39 = vmul.f32 %v2057_v27, %v2585_v18  ;;  %v2591_v41 = vpop.xlane.xlu2 %1515  ;;  %v2595_v44 = vpop.xlane.xlu0 %1590  ;;  %vm1448_vm10 = vweird.f32 %v2057_v27 }
 0xbab   :  { %v1234_v30 = vsel %vm1231_vm11, %v1233_v29, %v1229_v36  ;;  %2058 = vrcp.f32 %v2591_v41  ;;  %vm1447_vm11 = vweird.f32 %v2585_v18  ;;  %v1528_v35 = vand.u32 2147483648, %v2591_v41 }
 0xbac   :  { %v1235_v31 = vmul.f32 %v2548_v19, %v1234_v30  ;;  %v1300_v42 = vadd.f32 %v2055_v2, %v1299_v37  ;;  %v1444_v43 = vsub.f32 1.0, %v1443_v39  ;;  %2060 = vrcp.f32 %v2595_v44  ;;  %vm1449_vm14 = vmor %vm1447_vm11, %vm1448_vm10 }
 0xbad   :  { %v1375_v19 = vadd.f32 %v2583_v15, %v1374_v45  ;;  %vm1522_vm5 = vweird.f32 %v2591_v41  ;;  %v1603_v20 = vand.u32 2147483648, %v2595_v44  ;;  %v1529_v23 = vor.u32 1.1754944e-38, %v1528_v35 }
 0xbae   :  { %v1304_v47 = vsel %vm1303_vm15, %v2055_v2, %v1300_v42  ;;  %v1236_v49 = vpack.c.bf16 %v1235_v31, %v1235_v31  ;;  %v1445_v50 = vmul.f32 %v2057_v27, %v1444_v43  ;;  %vm1452_vm15 = vcmp.eq.f32.partialorder %v1451_v9, 8.507059e+37 }
 0xbaf   :  { %v1309_v48 = vsel %vm1306_vm4, %v1308_v46, %v1304_v47  ;;  %v1379_v63 = vsel %vm1378_vm7, %v2583_v15, %v1375_v19  ;;  %v1601_v24 = vand.u32 2147483647, %v2595_v44  ;;  %v1604_v29 = vor.u32 1.1754944e-38, %v1603_v20 }
 0xbb0   :  { %v1310_v58 = vmul.f32 %v2553_v21, %v1309_v48  ;;  %1897 = vmatmul.msk.bf16.vlgmr.msra.gmra.mxu1 %vm178_vm8, %v1236_v49  ;;  %v1446_v21 = vadd.f32 %v2057_v27, %v1445_v50  ;;  %v1384_v60 = vsel %vm1381_vm13, %v1383_v5, %v1379_v63  ;;  %v1668_v5 = vperm.slane %v2459_v38, 2 }
 0xbb1   :  { %v2059_v51 = vpop.eup %2058  ;;  %v1385_v40 = vmul.f32 %v2540_v6, %v1384_v60  ;;  %v1526_v6 = vand.u32 2147483647, %v2591_v41  ;;  %vm1602_vm13 = vcmp.eq.f32.partialorder %v1601_v24, 8.507059e+37 }
 0xbb2   :  { %v1534_v57 = vpop.permute.xlu2 %1533  ;;  %v1311_v28 = vpack.c.bf16 %v1310_v58, %v1310_v58  ;;  %v2061_v62 = vpop.eup %2060  ;;  %v1518_v4 = vmul.f32 %v2059_v51, %v2591_v41  ;;  %v1450_v11 = vsel %vm1449_vm14, %v2057_v27, %v1446_v21  ;;  %vm1523_vm4 = vweird.f32 %v2059_v51 }
 0xbb3   :  { %v1539_v55 = vsel %vm229_vm9, %v1534_v57, 0  ;;  %v1593_v56 = vmul.f32 %v2061_v62, %v2595_v44  ;;  %v1455_v61 = vsel %vm1452_vm15, %v1454_v14, %v1450_v11  ;;  %v1386_v18 = vpack.c.bf16 %v1385_v40, %v1385_v40  ;;  %vm1524_vm6 = vmor %vm1522_vm5, %vm1523_vm4 }
 0xbb4   :  { %1899 = vmatmul.msk.bf16.vlgmr.msrb.gmra.mxu2 %vm178_vm8, %v1311_v28  ;;  %1548 = vmatpush.bf16.msra.mxu1 %v1539_v55  ;;  %v1519_v0 = vsub.f32 1.0, %v1518_v4  ;;  %v1456_v17 = vmul.f32 %v2557_v26, %v1455_v61  ;;  %vm1598_vm7 = vweird.f32 %v2061_v62  ;;  %vm1527_vm10 = vcmp.eq.f32.partialorder %v1526_v6, 8.507059e+37  ;;  %v1956_v28 = vld [vmem:[#allocation6 + $0x68] sm:$0xff] }
 0xbb5   :  { %v1594_v7 = vsub.f32 1.0, %v1593_v56  ;;  %1658 = vmatpush.bf16.msrb.mxu0 %v1956_v28  ;;  %v1722_v28 = vperm.slane %v2459_v38, 6 }
 0xbb6   :  { %v1520_v15 = vmul.f32 %v2059_v51, %v1519_v0  ;;  %v1457_v22 = vpack.c.bf16 %v1456_v17, %v1456_v17 }
 0xbb7   :  { %v1595_v12 = vmul.f32 %v2061_v62, %v1594_v7 }
 0xbb8   :  { %v1521_v2 = vadd.f32 %v2059_v51, %v1520_v15 }
 0xbb9   :  { %v1596_v1 = vadd.f32 %v2061_v62, %v1595_v12  ;;  %1659 = vmatpush.bf16.msrb.mxu0 %v1955_v59 }
 0xbba   :  { %v1525_v26 = vsel %vm1524_vm6, %v2059_v51, %v1521_v2 }
 0xbbb   :  { %v1530_v25 = vsel %vm1527_vm10, %v1529_v23, %v1525_v26  ;;  %v1957_v26 = vld [vmem:[#allocation6 + $0x70] sm:$0xff] }
 0xbbc   :  { %v1531_v32 = vmul.f32 %v2561_v33, %v1530_v25 }
 0xbbd   :  { %v1609_v16 = vpop.permute.xlu0 %1608 }
 0xbbe   :  { %v1614_v53 = vsel %vm229_vm9, %v1609_v16, 0  ;;  %vm1597_vm9 = vweird.f32 %v2595_v44  ;;  %v1532_v37 = vpack.c.bf16 %v1531_v32, %v1531_v32 }
 0xbbf   :  { %1623 = vmatpush.bf16.msrb.mxu2 %v1614_v53  ;;  %vm1599_vm11 = vmor %vm1597_vm9, %vm1598_vm7 }
 0xbc0   :  { %1901 = vmatmul.msk.bf16.vlgmr.msrb.gmra.mxu1 %vm178_vm8, %v1386_v18  ;;  %v1600_v27 = vsel %vm1599_vm11, %v2061_v62, %v1596_v1 }
 0xbc1   :  { %v1605_v54 = vsel %vm1602_vm13, %v1604_v29, %v1600_v27 }
 0xbc2   :  { %v1606_v36 = vmul.f32 %v2563_v34, %v1605_v54 }
 0xbc4   :  { %1903 = vmatmul.msk.bf16.vlgmr.msra.gmra.mxu2 %vm178_vm8, %v1457_v22  ;;  %v1607_v39 = vpack.c.bf16 %v1606_v36, %v1606_v36  ;;  %v1958_v22 = vld [vmem:[#allocation6 + $0x78] sm:$0xff] }
 0xbc5   :  { %1744 = vmatpush.bf16.msrb.mxu1 %v1958_v22 }
 0xbc9   :  { %1745 = vmatpush.bf16.msrb.mxu1 %v1957_v26 }
 0xbd0   :  { %1905 = vmatmul.msk.bf16.vlgmr.msra.gmra.mxu1 %vm178_vm8, %v1532_v37 }
 0xbd4   :  { %1907 = vmatmul.msk.bf16.vlgmr.msrb.gmra.mxu2 %vm178_vm8, %v1607_v39 }
 0xbec   :  { %v1108_v41 = vpop.f32.mrf.mxu1 }
 0xbed   :  { %1112 = vst.msk [vmem:[#allocation2] sm:$0xff] %vm178_vm8, %v1108_v41 }
 0xbf4   :  { %v1110_v30 = vpop.f32.mrf.mxu1 }
 0xbf9   :  { %v1179_v31 = vpop.f32.mrf.mxu2 }
 0xbfa   :  { %1184 = vrot.lane.b32.xlu1 %v1179_v31, %s2173_s1 }
 0xc01   :  { %v1181_v42 = vpop.f32.mrf.mxu2 }
 0xc2d   :  { %v1254_v43 = vpop.f32.mrf.mxu1 }
 0xc2e   :  { %1259 = vrot.lane.b32.xlu1 %v1254_v43, %s2186_s11 }
 0xc35   :  { %v1256_v33 = vpop.f32.mrf.mxu1 }
 0xc37   :  { %v1329_v44 = vpop.f32.mrf.mxu2 }
 0xc38   :  { %1334 = vrot.lane.b32.xlu1 %v1329_v44, %s2187_s12 }
 0xc3d   :  { %v1404_v34 = vpop.f32.mrf.mxu1 }
 0xc3e   :  { %1408 = vst.msk [vmem:[#allocation2 + $0x8] sm:$0xff] %vm178_vm8, %v1404_v34  ;;  %v1718_v34 = vperm.slane %v2459_v38, 4 }
 0xc3f   :  { %v1331_v45 = vpop.f32.mrf.mxu2 }
 0xc45   :  { %v1406_v46 = vpop.f32.mrf.mxu1 }
 0xc47   :  { %v1475_v47 = vpop.f32.mrf.mxu2 }
 0xc48   :  { %1480 = vrot.lane.b32.xlu0 %v1475_v47, %s2173_s1 }
 0xc4d   :  { %v1550_v48 = vpop.f32.mrf.mxu1 }
 0xc4f   :  { %v1477_v49 = vpop.f32.mrf.mxu2 }
 0xc50   :  { %1555 = vrot.lane.b32.xlu0 %v1550_v48, %s2186_s11 }
 0xc55   :  { %v1552_v58 = vpop.f32.mrf.mxu1 }
 0xc57   :  { %v1625_v50 = vpop.f32.mrf.mxu2 }
 0xc58   :  { %1630 = vrot.lane.b32.xlu0 %v1625_v50, %s2187_s12  ;;  %v1962_v50 = vld [vmem:[#allocation6 + $0x98] sm:$0xff] }
 0xc59   :  { %1786 = vmatpush.bf16.msrb.mxu3 %v1962_v50 }
 0xc5f   :  { %v1627_v19 = vpop.f32.mrf.mxu2 }
 0xc60   :  { %v1961_v19 = vld [vmem:[#allocation6 + $0x90] sm:$0xff] }
 0xc61   :  { %1787 = vmatpush.bf16.msrb.mxu3 %v1961_v19 }
 0xc6c   :  { %v1185_v51 = vpop.permute.xlu1 %1184 }
 0xc6d   :  { %1187 = vst.msk [vmem:[#allocation2] sm:$0xff] %vm321_vm1, %v1185_v51  ;;  %v1960_v51 = vld [vmem:[#allocation6 + $0x88] sm:$0xff] }
 0xc6e   :  { %1788 = vmatpush.bf16.msrb.mxu3 %v1960_v51 }
 0xca0   :  { %v1260_v52 = vpop.permute.xlu1 %1259 }
 0xca1   :  { %1262 = vst.msk [vmem:[#allocation2] sm:$0xff] %vm397_vm2, %v1260_v52  ;;  %v1959_v52 = vld [vmem:[#allocation6 + $0x80] sm:$0xff] }
 0xca2   :  { %1789 = vmatpush.bf16.msrb.mxu3 %v1959_v52 }
 0xcaa   :  { %v1335_v57 = vpop.permute.xlu1 %1334 }
 0xcab   :  { %1337 = vst.msk [vmem:[#allocation2] sm:$0xff] %vm473_vm3, %v1335_v57 }
 0xcb2   :  { %v1634_v63 = vld [vmem:[#allocation2] sm:$0xff] }
 0xcba   :  { %v1481_v55 = vpop.permute.xlu0 %1480 }
 0xcbb   :  { %1483 = vst.msk [vmem:[#allocation2 + $0x8] sm:$0xff] %vm321_vm1, %v1481_v55 }
 0xcc2   :  { %v1556_v21 = vpop.permute.xlu0 %1555 }
 0xcc3   :  { %1558 = vst.msk [vmem:[#allocation2 + $0x8] sm:$0xff] %vm397_vm2, %v1556_v21 }
 0xcca   :  { %v1631_v62 = vpop.permute.xlu0 %1630 }
 0xccb   :  { %1633 = vst.msk [vmem:[#allocation2 + $0x8] sm:$0xff] %vm473_vm3, %v1631_v62 }
 0xcd2   :  { %v1635_v3 = vld [vmem:[#allocation2 + $0x8] sm:$0xff] }
 0xcd3   :  { %v1636_v4 = vpack.c.bf16 %v1635_v3, %v1634_v63 }
 0xcd5   :  { %1916 = vmatmul.msk.bf16.vlgmr.msrb.gmra.mxu0 %vm86_vm0, %v1636_v4  ;;  %v1798_v4 = vperm.slane %v2459_v38, 5 }
 0xd52   :  { %v1661_v9 = vpop.f32.mrf.mxu0 }
 0xd53   :  { %v1666_v60 = vadd.f32 %v1661_v9, %v2442_v8 }
 0xd55   :  { %v2646_v11 = vadd.f32 %v1668_v5, %v1666_v60 }
 0xd57   :  { %v1671_v56 = vsel %vm86_vm0, %v2646_v11, 0.0 }
 0xd58   :  { %1672 = vadd.xlane.f32.xlu2 %v1671_v56 }
 0xd5a   :  { %v1663_v14 = vpop.f32.mrf.mxu0 }
 0xd5b   :  { %v1667_v0 = vadd.f32 %v1663_v14, %v2447_v13 }
 0xd5d   :  { %v2651_v40 = vadd.f32 %v1668_v5, %v1667_v0 }
 0xd5f   :  { %v1674_v61 = vsel %vm86_vm0, %v2651_v40, 0.0 }
 0xd60   :  { %1675 = vadd.xlane.f32.xlu1 %v1674_v61 }
 0xdcb   :  { %v1673_v7 = vpop.xlane.xlu2 %1672 }
 0xdcc   :  { %v1677_v15 = vmul.f32 %v1673_v7, %v2234_v10 }
 0xdce   :  { %v1679_v8 = vsub.f32 %v2646_v11, %v1677_v15 }
 0xdd0   :  { %v1681_v16 = vmul.f32 %v1679_v8, %v1679_v8 }
 0xdd2   :  { %v1683_v17 = vsel %vm86_vm0, %v1681_v16, 0.0 }
 0xdd3   :  { %1684 = vadd.xlane.f32.xlu0 %v1683_v17  ;;  %v1676_v53 = vpop.xlane.xlu1 %1675 }
 0xdd4   :  { %v1678_v18 = vmul.f32 %v1676_v53, %v2234_v10 }
 0xdd6   :  { %v1680_v13 = vsub.f32 %v2651_v40, %v1678_v18 }
 0xdd8   :  { %v1682_v12 = vmul.f32 %v1680_v13, %v1680_v13 }
 0xdda   :  { %v1686_v2 = vsel %vm86_vm0, %v1682_v12, 0.0 }
 0xddb   :  { %1687 = vadd.xlane.f32.xlu2 %v1686_v2 }
 0xe46   :  { %v1685_v35 = vpop.xlane.xlu0 %1684 }
 0xe47   :  { %v1689_v6 = vmul.f32 %v1685_v35, %v2234_v10 }
 0xe49   :  { %v1691_v1 = vadd.f32 1e-05, %v1689_v6 }
 0xe4b   :  { %2062 = vrsqrt.f32 %v1691_v1  ;;  %vm1699_vm1 = vweird.f32 %v1691_v1 }
 0xe4e   :  { %v1688_v20 = vpop.xlane.xlu2 %1687 }
 0xe4f   :  { %v1690_v23 = vmul.f32 %v1688_v20, %v2234_v10  ;;  %v1715_v10 = vperm.slane %v2459_v38, 3 }
 0xe51   :  { %v2063_v24 = vpop.eup %2062  ;;  %v1692_v25 = vadd.f32 1e-05, %v1690_v23 }
 0xe52   :  { %v1694_v27 = vmul.f32 %v2063_v24, %v1691_v1  ;;  %vm1700_vm8 = vweird.f32 %v2063_v24 }
 0xe53   :  { %2064 = vrsqrt.f32 %v1692_v25  ;;  %vm1701_vm2 = vmor %vm1699_vm1, %vm1700_vm8  ;;  %vm1709_vm14 = vweird.f32 %v1692_v25 }
 0xe54   :  { %v1695_v29 = vmul.f32 %v2063_v24, %v1694_v27 }
 0xe56   :  { %v1696_v32 = vmul.f32 0.5, %v1695_v29 }
 0xe58   :  { %v1697_v54 = vsub.f32 1.5, %v1696_v32 }
 0xe59   :  { %v2065_v36 = vpop.eup %2064 }
 0xe5a   :  { %v1698_v37 = vmul.f32 %v2063_v24, %v1697_v54  ;;  %v1704_v39 = vmul.f32 %v2065_v36, %v1692_v25  ;;  %vm1710_vm3 = vweird.f32 %v2065_v36 }
 0xe5b   :  { %vm1711_vm15 = vmor %vm1709_vm14, %vm1710_vm3 }
 0xe5c   :  { %v1705_v41 = vmul.f32 %v2065_v36, %v1704_v39  ;;  %v1702_v30 = vsel %vm1701_vm2, %v2063_v24, %v1698_v37 }
 0xe5d   :  { %v1713_v43 = vmul.f32 %v1702_v30, %v1679_v8 }
 0xe5e   :  { %v1706_v31 = vmul.f32 0.5, %v1705_v41 }
 0xe5f   :  { %v1716_v45 = vmul.f32 %v1715_v10, %v1713_v43 }
 0xe60   :  { %v1707_v42 = vsub.f32 1.5, %v1706_v31 }
 0xe61   :  { %v1719_v48 = vadd.f32 %v1718_v34, %v1716_v45 }
 0xe62   :  { %v1708_v33 = vmul.f32 %v2065_v36, %v1707_v42 }
 0xe64   :  { %v1712_v44 = vsel %vm1711_vm15, %v2065_v36, %v1708_v33 }
 0xe65   :  { %v1714_v46 = vmul.f32 %v1712_v44, %v1680_v13 }
 0xe67   :  { %v1717_v47 = vmul.f32 %v1715_v10, %v1714_v46 }
 0xe69   :  { %v1720_v49 = vadd.f32 %v1718_v34, %v1717_v47 }
 0xe6b   :  { %v1721_v58 = vpack.c.bf16 %v1720_v49, %v1719_v48 }
 0xe6d   :  { %1925 = vmatmul.msk.bf16.vlgmr.msrb.gmra.mxu1 %vm86_vm0, %v1721_v58 }
 0xeea   :  { %v1747_v57 = vpop.f32.mrf.mxu1 }
 0xeeb   :  { %v1748_v59 = vadd.f32 %v1747_v57, %v1722_v28 }
 0xeed   :  { %v1752_v62 = vmax.f32 %v1748_v59, 0.0 }
 0xef2   :  { %v1749_v55 = vpop.f32.mrf.mxu1 }
 0xef3   :  { %v1750_v21 = vadd.f32 %v1749_v55, %v1722_v28 }
 0xef5   :  { %v1753_v63 = vmax.f32 %v1750_v21, 0.0 }
 0xef7   :  { %v1754_v3 = vpack.c.bf16 %v1753_v63, %v1752_v62 }
 0xef9   :  { %1942 = vmatmul.msk.bf16.vlgmr.msrb.gmra.mxu3 %vm916_vm12, %v1754_v3 }
 0xf7c   :  { %v1791_v5 = vpop.f32.mrf.mxu3 }
 0xf7d   :  { %v1796_v9 = vadd.f32 %v1791_v5, %v2646_v11 }
 0xf7f   :  { %v1799_v60 = vadd.f32 %v1798_v4, %v1796_v9 }
 0xf81   :  { %1801 = vst.msk [vmem:[#allocation9] sm:$0xff] %vm86_vm0, %v1799_v60 }
 0xf84   :  { %v1793_v56 = vpop.f32.mrf.mxu3 }
 0xf85   :  { %v1797_v14 = vadd.f32 %v1793_v56, %v2651_v40 }
 0xf87   :  { %v1800_v0 = vadd.f32 %v1798_v4, %v1797_v14 }
 0xf89   :  { %1802 = vst.msk [vmem:[#allocation9 + $0x8] sm:$0xff] %vm86_vm0, %v1800_v0 }
 0xf8a   :  { %1815 = dma.vmem_to_hbm [thread:$0]  %s1808_s14, 256, %s1810_s17, [#allocation5], %s2172_s24, %s2172_s24, %s2173_s1  }
 0xf8b   :  { %2166 = dma.done.wait [#allocation5], 256  }
 0xf8c   :  { %2167 = vsyncadd [#allocation5], 4294967040 }
 0xf8d   :  { %1820 = vsyncpa [#allocation4], 1 }
 0xf8e   :  { %1821 = vsyncpa [#allocation7], 1 }
 0xf8f   :  { %1822 = vsyncpa [#allocation5], 1 }

</bundles_post_ra>
